<compile_context>
chip_gen: v7x
topology: tpu7x:2x2x1
jax: 0.10.0
libtpu: 0.0.40
codegen_flags: <defaults>
</compile_context>

<pallas_src>
import jax
import jax.numpy as jnp
from jax.experimental import pallas as pl
from jax.experimental.pallas import tpu as pltpu

BN_EPS = 1e-5


def _round_up(x, m):
    return (x + m - 1) // m * m


def conv_block_forward(x, weight, bias, gamma, beta, padding):
    """x: (N, C, H, W) f32; weight: (OC, C, KH, KW). Returns NCHW f32 output."""
    n, c, h, w = x.shape
    oc, _, kh, kw = weight.shape
    p = padding
    hp, wp = h + 2 * p, w + 2 * p
    oh, ow = hp - kh + 1, wp - kw + 1
    assert oh > 0 and ow > 0

    # Training-mode BatchNorm subtracts the batch mean per channel, which
    # cancels a per-channel conv bias exactly -> drop it.
    del bias

    c_pad = _round_up(c, 128)        # lane-dense contraction dim
    oc_pad = _round_up(oc, 128)      # lane-dense output dim (unmasked vst)

    m2 = n * hp * wp                 # over-complete flat output rows
    m_valid = n * oh * ow            # true BN population size

    # Row-shift range covered inside one tile; tile sizes are powers of two so
    # the halo block size divides the main tile size (hb | tm), keeping both
    # BlockSpecs plain Blocked (no Element indexing, no manual DMA).
    halo = (kh - 1) * wp + (kw - 1)
    tm = max(256, pl.next_power_of_2(max(halo, 1)))      # pass-1 row tile
    hb = max(16, pl.next_power_of_2(max(halo, 1)))       # halo tile (hb >= halo)
    ratio = tm // hb
    tm2 = min(max(tm, 1024), _round_up(m2, tm))          # pass-2 row tile
    m2_pad = _round_up(m2, tm2)                          # multiple of tm and tm2
    nt1 = m2_pad // tm
    nt2 = m2_pad // tm2

    # ---------------- operand prep (bf16, fusible pads, no extra full copy) --
    x_nhwc = jnp.transpose(x.astype(jnp.bfloat16), (0, 2, 3, 1))      # (N,H,W,C)
    x_nhwc = jnp.pad(x_nhwc, ((0, 0), (p, p), (p, p), (0, c_pad - c)))
    x_flat = x_nhwc.reshape(m2, c_pad)
    x_flat = jnp.pad(x_flat, ((0, m2_pad + tm - m2), (0, 0)))         # tail zeros

    w_k = jnp.transpose(weight.astype(jnp.bfloat16), (2, 3, 1, 0))    # (KH,KW,C,OC)
    w_k = jnp.pad(w_k, ((0, 0), (0, 0), (0, c_pad - c), (0, oc_pad - oc)))
    w_k = w_k.reshape(kh * kw, c_pad, oc_pad)

    # Per-row validity mask over the over-complete flat grid (1 = real conv
    # output position, 0 = garbage / padding).  Keeps BN stats exact.
    r = jnp.arange(m2_pad, dtype=jnp.int32)
    valid = (r < m2) & ((r % wp) < ow) & (((r // wp) % hp) < oh)
    mask = valid.astype(jnp.float32).reshape(m2_pad, 1)

    cparams = pltpu.CompilerParams(
        dimension_semantics=("parallel",),
        vmem_limit_bytes=48 << 20,   # >= v5e needs, <= v7x 64 MiB physical
    )

    # ---------------- pass 1: implicit-im2col matmul + partial BN stats ------
    def conv_stats_kernel(a_ref, b_ref, w_ref, mask_ref, y_ref, sum_ref, sumsq_ref):
        # Shifted-window assembly is done in f32 (robust 32-bit sublane
        # relayouts); MXU operands are bf16, accumulation is f32.
        a = a_ref[...].astype(jnp.float32)                    # (tm, c_pad)
        b = b_ref[...].astype(jnp.float32)                    # (hb, c_pad)
        full = jnp.concatenate([a, b], axis=0)                # (tm+hb, c_pad)
        acc = jnp.zeros((tm, oc_pad), jnp.float32)
        for s in range(kh * kw):                              # static unroll
            off = (s // kw) * wp + (s % kw)
            lhs = full[off:off + tm, :].astype(jnp.bfloat16)
            acc = acc + jnp.dot(lhs, w_ref[s],
                                preferred_element_type=jnp.float32)
        # Masked per-channel partial sums, folded to (8, oc_pad) tiles; the
        # tiny cross-tile reduction happens outside the kernel.
        msk = mask_ref[...]                                   # (tm, 1) 0/1
        ym = acc * msk
        sum_ref[...] = jnp.sum(ym.reshape(tm // 8, 8, oc_pad), axis=0)
        sumsq_ref[...] = jnp.sum((ym * acc).reshape(tm // 8, 8, oc_pad), axis=0)
        # Inter-pass activation stored bf16 (stats already taken from f32 acc).
        y_ref[...] = acc.astype(jnp.bfloat16)

    y, psum, psumsq = pl.pallas_call(
        conv_stats_kernel,
        grid=(nt1,),
        in_specs=[
            pl.BlockSpec((tm, c_pad), lambda i: (i, 0)),
            pl.BlockSpec((hb, c_pad), lambda i: (i * ratio + ratio, 0)),  # halo
            pl.BlockSpec((kh * kw, c_pad, oc_pad), lambda i: (0, 0, 0)),
            pl.BlockSpec((tm, 1), lambda i: (i, 0)),
        ],
        out_specs=[
            pl.BlockSpec((tm, oc_pad), lambda i: (i, 0)),
            pl.BlockSpec((8, oc_pad), lambda i: (i, 0)),
            pl.BlockSpec((8, oc_pad), lambda i: (i, 0)),
        ],
        out_shape=[
            jax.ShapeDtypeStruct((m2_pad, oc_pad), jnp.bfloat16),
            jax.ShapeDtypeStruct((nt1 * 8, oc_pad), jnp.float32),
            jax.ShapeDtypeStruct((nt1 * 8, oc_pad), jnp.float32),
        ],
        compiler_params=cparams,
    )(x_flat, x_flat, w_k, mask)

    # ---------------- tiny per-channel epilogue (plain XLA) ------------------
    # NOTE: E[y^2]-mean^2 can lose precision for poorly centered activations;
    # acceptable here (f32 accumulation, clamped), documented per review.
    total = jnp.sum(psum, axis=0)
    total_sq = jnp.sum(psumsq, axis=0)
    mean = total / m_valid
    var = jnp.maximum(total_sq / m_valid - mean * mean, 0.0)
    gamma_p = jnp.pad(gamma.astype(jnp.float32), (0, oc_pad - oc))
    beta_p = jnp.pad(beta.astype(jnp.float32), (0, oc_pad - oc))
    scale = gamma_p * jax.lax.rsqrt(var + BN_EPS)
    shift = beta_p - mean * scale

    # ---------------- pass 2: normalize (affine) + ReLU, big row tiles -------
    def bn_relu_kernel(y_ref, scale_ref, shift_ref, o_ref):
        yv = y_ref[...].astype(jnp.float32)
        o_ref[...] = jnp.maximum(yv * scale_ref[...] + shift_ref[...], 0.0)

    out_flat = pl.pallas_call(
        bn_relu_kernel,
        grid=(nt2,),
        in_specs=[
            pl.BlockSpec((tm2, oc_pad), lambda i: (i, 0)),
            pl.BlockSpec((1, oc_pad), lambda i: (0, 0)),
            pl.BlockSpec((1, oc_pad), lambda i: (0, 0)),
        ],
        out_specs=pl.BlockSpec((tm2, oc_pad), lambda i: (i, 0)),
        out_shape=jax.ShapeDtypeStruct((m2_pad, oc_pad), jnp.float32),
        compiler_params=cparams,
    )(y, scale.reshape(1, oc_pad), shift.reshape(1, oc_pad))

    # Slice out the valid output positions / channels, back to NCHW.
    out = out_flat[:m2].reshape(n, hp, wp, oc_pad)[:, :oh, :ow, :oc]
    return jnp.transpose(out, (0, 3, 1, 2))


def _reference(x, weight, bias, gamma, beta, padding):
    y = jax.lax.conv_general_dilated(
        x, weight, window_strides=(1, 1),
        padding=[(padding, padding), (padding, padding)],
        dimension_numbers=("NCHW", "OIHW", "NCHW"))
    y = y + bias.reshape(1, -1, 1, 1)
    mean = jnp.mean(y, axis=(0, 2, 3), keepdims=True)
    var = jnp.mean((y - mean) ** 2, axis=(0, 2, 3), keepdims=True)
    y = (y - mean) * jax.lax.rsqrt(var + BN_EPS)
    y = y * gamma.reshape(1, -1, 1, 1) + beta.reshape(1, -1, 1, 1)
    return jnp.maximum(y, 0.0)


if __name__ == "__main__":
    in_channels, out_channels, kernel_size, padding = 4, 8, 3, 1
    N, H, W = 2, 16, 16

    key = jax.random.PRNGKey(0)
    kx, kw_, kb = jax.random.split(key, 3)

    x = jax.random.normal(kx, (N, in_channels, H, W), dtype=jnp.float32)
    weight = 0.1 * jax.random.normal(
        kw_, (out_channels, in_channels, kernel_size, kernel_size),
        dtype=jnp.float32)
    bias = 0.1 * jax.random.normal(kb, (out_channels,), dtype=jnp.float32)
    gamma = jnp.ones((out_channels,), dtype=jnp.float32)   # BN weight init
    beta = jnp.zeros((out_channels,), dtype=jnp.float32)   # BN bias init

    out = conv_block_forward(x, weight, bias, gamma, beta, padding)
    jax.block_until_ready(out)

    assert out.shape == (N, out_channels, H, W), out.shape
    assert bool(jnp.all(jnp.isfinite(out)))

    ref = _reference(x, weight, bias, gamma, beta, padding)
    max_err = float(jnp.max(jnp.abs(out - ref)))
    assert max_err < 1e-1, f"max |err| = {max_err}"

    print("KERNEL_OK")
</pallas_src>

<mosaic_0001>
module attributes {stable_mosaic.version = 11 : i64} {
  func.func @conv_stats_kernel(%arg0: i32, %arg1: memref<256x128xbf16, #tpu.memory_space<vmem>>, %arg2: memref<64x128xbf16, #tpu.memory_space<vmem>>, %arg3: memref<9x128x128xbf16, #tpu.memory_space<vmem>>, %arg4: memref<256x1xf32, #tpu.memory_space<vmem>>, %arg5: memref<256x128xbf16, #tpu.memory_space<vmem>>, %arg6: memref<8x128xf32, #tpu.memory_space<vmem>>, %arg7: memref<8x128xf32, #tpu.memory_space<vmem>>) attributes {dimension_semantics = [#tpu.dimension_semantics<parallel>], iteration_bounds = array<i64: 3>, scalar_prefetch = 0 : i64, scratch_operands = 0 : i64, tpu.core_type = #tpu.core_type<tc>, window_params = [{transform_indices = @transform_0, window_bounds = array<i64: 256, 128>}, {transform_indices = @transform_1, window_bounds = array<i64: 64, 128>}, {pipeline_mode = #tpu.pipeline_mode<synchronous>, transform_indices = @transform_2, window_bounds = array<i64: 9, 128, 128>}, {transform_indices = @transform_3, window_bounds = array<i64: 256, 1>}, {transform_indices = @transform_4, window_bounds = array<i64: 256, 128>}, {transform_indices = @transform_5, window_bounds = array<i64: 8, 128>}, {transform_indices = @transform_6, window_bounds = array<i64: 8, 128>}]} {
    %c0 = arith.constant 0 : index
    %c0_0 = arith.constant 0 : index
    %0 = vector.load %arg1[%c0, %c0_0] : memref<256x128xbf16, #tpu.memory_space<vmem>>, vector<256x128xbf16>
    %1 = arith.extf %0 : vector<256x128xbf16> to vector<256x128xf32>
    %c0_1 = arith.constant 0 : index
    %c0_2 = arith.constant 0 : index
    %2 = vector.load %arg2[%c0_1, %c0_2] : memref<64x128xbf16, #tpu.memory_space<vmem>>, vector<64x128xbf16>
    %3 = arith.extf %2 : vector<64x128xbf16> to vector<64x128xf32>
    %4 = tpu.concatenate %1, %3 in 0 : vector<256x128xf32>, vector<64x128xf32> -> vector<320x128xf32>
    %cst = arith.constant 0.000000e+00 : f32
    %5 = vector.broadcast %cst : f32 to vector<256x128xf32>
    %6 = vector.extract_strided_slice %4 {offsets = [0, 0], sizes = [256, 128], strides = [1, 1]} : vector<320x128xf32> to vector<256x128xf32>
    %7 = arith.truncf %6 : vector<256x128xf32> to vector<256x128xbf16>
    %c0_3 = arith.constant 0 : index
    %c0_4 = arith.constant 0 : index
    %c0_5 = arith.constant 0 : index
    %8 = vector.load %arg3[%c0_3, %c0_4, %c0_5] : memref<9x128x128xbf16, #tpu.memory_space<vmem>>, vector<1x128x128xbf16>
    %9 = vector.shape_cast %8 : vector<1x128x128xbf16> to vector<128x128xbf16>
    %cst_6 = arith.constant dense<0.000000e+00> : vector<256x128xf32>
    %10 = tpu.matmul %7, %9, %cst_6 {dimension_numbers = #tpu.dot_dimension_numbers<[1], [0], [0], [1], [0, 0, 1, 1], [], []>} : vector<256x128xbf16>, vector<128x128xbf16>, vector<256x128xf32> -> vector<256x128xf32>
    %11 = arith.addf %5, %10 : vector<256x128xf32>
    %12 = vector.extract_strided_slice %4 {offsets = [1, 0], sizes = [256, 128], strides = [1, 1]} : vector<320x128xf32> to vector<256x128xf32>
    %13 = arith.truncf %12 : vector<256x128xf32> to vector<256x128xbf16>
    %c1 = arith.constant 1 : index
    %c0_7 = arith.constant 0 : index
    %c0_8 = arith.constant 0 : index
    %14 = vector.load %arg3[%c1, %c0_7, %c0_8] : memref<9x128x128xbf16, #tpu.memory_space<vmem>>, vector<1x128x128xbf16>
    %15 = vector.shape_cast %14 : vector<1x128x128xbf16> to vector<128x128xbf16>
    %cst_9 = arith.constant dense<0.000000e+00> : vector<256x128xf32>
    %16 = tpu.matmul %13, %15, %cst_9 {dimension_numbers = #tpu.dot_dimension_numbers<[1], [0], [0], [1], [0, 0, 1, 1], [], []>} : vector<256x128xbf16>, vector<128x128xbf16>, vector<256x128xf32> -> vector<256x128xf32>
    %17 = arith.addf %11, %16 : vector<256x128xf32>
    %18 = vector.extract_strided_slice %4 {offsets = [2, 0], sizes = [256, 128], strides = [1, 1]} : vector<320x128xf32> to vector<256x128xf32>
    %19 = arith.truncf %18 : vector<256x128xf32> to vector<256x128xbf16>
    %c2 = arith.constant 2 : index
    %c0_10 = arith.constant 0 : index
    %c0_11 = arith.constant 0 : index
    %20 = vector.load %arg3[%c2, %c0_10, %c0_11] : memref<9x128x128xbf16, #tpu.memory_space<vmem>>, vector<1x128x128xbf16>
    %21 = vector.shape_cast %20 : vector<1x128x128xbf16> to vector<128x128xbf16>
    %cst_12 = arith.constant dense<0.000000e+00> : vector<256x128xf32>
    %22 = tpu.matmul %19, %21, %cst_12 {dimension_numbers = #tpu.dot_dimension_numbers<[1], [0], [0], [1], [0, 0, 1, 1], [], []>} : vector<256x128xbf16>, vector<128x128xbf16>, vector<256x128xf32> -> vector<256x128xf32>
    %23 = arith.addf %17, %22 : vector<256x128xf32>
    %24 = vector.extract_strided_slice %4 {offsets = [18, 0], sizes = [256, 128], strides = [1, 1]} : vector<320x128xf32> to vector<256x128xf32>
    %25 = arith.truncf %24 : vector<256x128xf32> to vector<256x128xbf16>
    %c3 = arith.constant 3 : index
    %c0_13 = arith.constant 0 : index
    %c0_14 = arith.constant 0 : index
    %26 = vector.load %arg3[%c3, %c0_13, %c0_14] : memref<9x128x128xbf16, #tpu.memory_space<vmem>>, vector<1x128x128xbf16>
    %27 = vector.shape_cast %26 : vector<1x128x128xbf16> to vector<128x128xbf16>
    %cst_15 = arith.constant dense<0.000000e+00> : vector<256x128xf32>
    %28 = tpu.matmul %25, %27, %cst_15 {dimension_numbers = #tpu.dot_dimension_numbers<[1], [0], [0], [1], [0, 0, 1, 1], [], []>} : vector<256x128xbf16>, vector<128x128xbf16>, vector<256x128xf32> -> vector<256x128xf32>
    %29 = arith.addf %23, %28 : vector<256x128xf32>
    %30 = vector.extract_strided_slice %4 {offsets = [19, 0], sizes = [256, 128], strides = [1, 1]} : vector<320x128xf32> to vector<256x128xf32>
    %31 = arith.truncf %30 : vector<256x128xf32> to vector<256x128xbf16>
    %c4 = arith.constant 4 : index
    %c0_16 = arith.constant 0 : index
    %c0_17 = arith.constant 0 : index
    %32 = vector.load %arg3[%c4, %c0_16, %c0_17] : memref<9x128x128xbf16, #tpu.memory_space<vmem>>, vector<1x128x128xbf16>
    %33 = vector.shape_cast %32 : vector<1x128x128xbf16> to vector<128x128xbf16>
    %cst_18 = arith.constant dense<0.000000e+00> : vector<256x128xf32>
    %34 = tpu.matmul %31, %33, %cst_18 {dimension_numbers = #tpu.dot_dimension_numbers<[1], [0], [0], [1], [0, 0, 1, 1], [], []>} : vector<256x128xbf16>, vector<128x128xbf16>, vector<256x128xf32> -> vector<256x128xf32>
    %35 = arith.addf %29, %34 : vector<256x128xf32>
    %36 = vector.extract_strided_slice %4 {offsets = [20, 0], sizes = [256, 128], strides = [1, 1]} : vector<320x128xf32> to vector<256x128xf32>
    %37 = arith.truncf %36 : vector<256x128xf32> to vector<256x128xbf16>
    %c5 = arith.constant 5 : index
    %c0_19 = arith.constant 0 : index
    %c0_20 = arith.constant 0 : index
    %38 = vector.load %arg3[%c5, %c0_19, %c0_20] : memref<9x128x128xbf16, #tpu.memory_space<vmem>>, vector<1x128x128xbf16>
    %39 = vector.shape_cast %38 : vector<1x128x128xbf16> to vector<128x128xbf16>
    %cst_21 = arith.constant dense<0.000000e+00> : vector<256x128xf32>
    %40 = tpu.matmul %37, %39, %cst_21 {dimension_numbers = #tpu.dot_dimension_numbers<[1], [0], [0], [1], [0, 0, 1, 1], [], []>} : vector<256x128xbf16>, vector<128x128xbf16>, vector<256x128xf32> -> vector<256x128xf32>
    %41 = arith.addf %35, %40 : vector<256x128xf32>
    %42 = vector.extract_strided_slice %4 {offsets = [36, 0], sizes = [256, 128], strides = [1, 1]} : vector<320x128xf32> to vector<256x128xf32>
    %43 = arith.truncf %42 : vector<256x128xf32> to vector<256x128xbf16>
    %c6 = arith.constant 6 : index
    %c0_22 = arith.constant 0 : index
    %c0_23 = arith.constant 0 : index
    %44 = vector.load %arg3[%c6, %c0_22, %c0_23] : memref<9x128x128xbf16, #tpu.memory_space<vmem>>, vector<1x128x128xbf16>
    %45 = vector.shape_cast %44 : vector<1x128x128xbf16> to vector<128x128xbf16>
    %cst_24 = arith.constant dense<0.000000e+00> : vector<256x128xf32>
    %46 = tpu.matmul %43, %45, %cst_24 {dimension_numbers = #tpu.dot_dimension_numbers<[1], [0], [0], [1], [0, 0, 1, 1], [], []>} : vector<256x128xbf16>, vector<128x128xbf16>, vector<256x128xf32> -> vector<256x128xf32>
    %47 = arith.addf %41, %46 : vector<256x128xf32>
    %48 = vector.extract_strided_slice %4 {offsets = [37, 0], sizes = [256, 128], strides = [1, 1]} : vector<320x128xf32> to vector<256x128xf32>
    %49 = arith.truncf %48 : vector<256x128xf32> to vector<256x128xbf16>
    %c7 = arith.constant 7 : index
    %c0_25 = arith.constant 0 : index
    %c0_26 = arith.constant 0 : index
    %50 = vector.load %arg3[%c7, %c0_25, %c0_26] : memref<9x128x128xbf16, #tpu.memory_space<vmem>>, vector<1x128x128xbf16>
    %51 = vector.shape_cast %50 : vector<1x128x128xbf16> to vector<128x128xbf16>
    %cst_27 = arith.constant dense<0.000000e+00> : vector<256x128xf32>
    %52 = tpu.matmul %49, %51, %cst_27 {dimension_numbers = #tpu.dot_dimension_numbers<[1], [0], [0], [1], [0, 0, 1, 1], [], []>} : vector<256x128xbf16>, vector<128x128xbf16>, vector<256x128xf32> -> vector<256x128xf32>
    %53 = arith.addf %47, %52 : vector<256x128xf32>
    %54 = vector.extract_strided_slice %4 {offsets = [38, 0], sizes = [256, 128], strides = [1, 1]} : vector<320x128xf32> to vector<256x128xf32>
    %55 = arith.truncf %54 : vector<256x128xf32> to vector<256x128xbf16>
    %c8 = arith.constant 8 : index
    %c0_28 = arith.constant 0 : index
    %c0_29 = arith.constant 0 : index
    %56 = vector.load %arg3[%c8, %c0_28, %c0_29] : memref<9x128x128xbf16, #tpu.memory_space<vmem>>, vector<1x128x128xbf16>
    %57 = vector.shape_cast %56 : vector<1x128x128xbf16> to vector<128x128xbf16>
    %cst_30 = arith.constant dense<0.000000e+00> : vector<256x128xf32>
    %58 = tpu.matmul %55, %57, %cst_30 {dimension_numbers = #tpu.dot_dimension_numbers<[1], [0], [0], [1], [0, 0, 1, 1], [], []>} : vector<256x128xbf16>, vector<128x128xbf16>, vector<256x128xf32> -> vector<256x128xf32>
    %59 = arith.addf %53, %58 : vector<256x128xf32>
    %c0_31 = arith.constant 0 : index
    %c0_32 = arith.constant 0 : index
    %60 = vector.load %arg4[%c0_31, %c0_32] : memref<256x1xf32, #tpu.memory_space<vmem>>, vector<256x1xf32>
    %61 = vector.broadcast %60 : vector<256x1xf32> to vector<256x128xf32>
    %62 = arith.mulf %59, %61 : vector<256x128xf32>
    %63 = vector.shape_cast %62 : vector<256x128xf32> to vector<32x8x128xf32>
    %cst_33 = arith.constant dense<0.000000e+00> : vector<8x128xf32>
    %64 = vector.multi_reduction <add>, %63, %cst_33 [0] : vector<32x8x128xf32> to vector<8x128xf32>
    %c0_34 = arith.constant 0 : index
    %c0_35 = arith.constant 0 : index
    %65 = vector.load %arg6[%c0_34, %c0_35] : memref<8x128xf32, #tpu.memory_space<vmem>>, vector<8x128xf32>
    tpu.vector_store %arg6[%c0_34, %c0_35], %64 {strides = array<i32>} : memref<8x128xf32, #tpu.memory_space<vmem>>, vector<8x128xf32>,
    %66 = arith.mulf %62, %59 : vector<256x128xf32>
    %67 = vector.shape_cast %66 : vector<256x128xf32> to vector<32x8x128xf32>
    %cst_36 = arith.constant dense<0.000000e+00> : vector<8x128xf32>
    %68 = vector.multi_reduction <add>, %67, %cst_36 [0] : vector<32x8x128xf32> to vector<8x128xf32>
    %c0_37 = arith.constant 0 : index
    %c0_38 = arith.constant 0 : index
    %69 = vector.load %arg7[%c0_37, %c0_38] : memref<8x128xf32, #tpu.memory_space<vmem>>, vector<8x128xf32>
    tpu.vector_store %arg7[%c0_37, %c0_38], %68 {strides = array<i32>} : memref<8x128xf32, #tpu.memory_space<vmem>>, vector<8x128xf32>,
    %70 = arith.truncf %59 : vector<256x128xf32> to vector<256x128xbf16>
    %c0_39 = arith.constant 0 : index
    %c0_40 = arith.constant 0 : index
    %71 = vector.load %arg5[%c0_39, %c0_40] : memref<256x128xbf16, #tpu.memory_space<vmem>>, vector<256x128xbf16>
    tpu.vector_store %arg5[%c0_39, %c0_40], %70 {strides = array<i32>} : memref<256x128xbf16, #tpu.memory_space<vmem>>, vector<256x128xbf16>,
    return
  }
  func.func @transform_0(%arg0: i32) -> (i32, i32) {
    %c0_i32 = arith.constant 0 : i32
    %c0_i32_0 = arith.constant 0 : i32
    return %arg0, %c0_i32 : i32, i32
  }
  func.func @transform_1(%arg0: i32) -> (i32, i32) {
    %c4_i32 = arith.constant 4 : i32
    %0 = arith.muli %arg0, %c4_i32 : i32
    %c4_i32_0 = arith.constant 4 : i32
    %1 = arith.addi %0, %c4_i32_0 : i32
    %c0_i32 = arith.constant 0 : i32
    %c0_i32_1 = arith.constant 0 : i32
    return %1, %c0_i32 : i32, i32
  }
  func.func @transform_2(%arg0: i32) -> (i32, i32, i32) {
    %c0_i32 = arith.constant 0 : i32
    %c0_i32_0 = arith.constant 0 : i32
    %c0_i32_1 = arith.constant 0 : i32
    %c0_i32_2 = arith.constant 0 : i32
    return %c0_i32, %c0_i32_0, %c0_i32_1 : i32, i32, i32
  }
  func.func @transform_3(%arg0: i32) -> (i32, i32) {
    %c0_i32 = arith.constant 0 : i32
    %c0_i32_0 = arith.constant 0 : i32
    return %arg0, %c0_i32 : i32, i32
  }
  func.func @transform_4(%arg0: i32) -> (i32, i32) {
    %c0_i32 = arith.constant 0 : i32
    %c0_i32_0 = arith.constant 0 : i32
    return %arg0, %c0_i32 : i32, i32
  }
  func.func @transform_5(%arg0: i32) -> (i32, i32) {
    %c0_i32 = arith.constant 0 : i32
    %c0_i32_0 = arith.constant 0 : i32
    return %arg0, %c0_i32 : i32, i32
  }
  func.func @transform_6(%arg0: i32) -> (i32, i32) {
    %c0_i32 = arith.constant 0 : i32
    %c0_i32_0 = arith.constant 0 : i32
    return %arg0, %c0_i32 : i32, i32
  }
}

</mosaic_0001>

<bundles_post_ra>
// kernel: tpu_custom_call.1
= control target key start
LH: loop header
LB: loop body
LE: loop exit
PB: predicated region body
PF: predicated region fallthrough
CT: control target
= control target key end

     0   :  { %s7117_s0 = inlined_call_operand.hbm [shape: bf16[1024,128], index: 0, kind: input, shape index: {}]   ;;  %s7118_s1 = inlined_call_operand.hbm [shape: bf16[1024,128], index: 1, kind: input, shape index: {}]   ;;  %s7119_s2 = inlined_call_operand.vmem [shape: bf16[9,128,128], index: 2, kind: input, shape index: {}]   ;;  %s7120_s3 = inlined_call_operand.vmem [shape: f32[768,1], index: 3, kind: input, shape index: {}]   ;;  %s7121_s4 = inlined_call_operand.hbm [shape: bf16[768,128], index: 4, kind: output, shape index: {0}]   ;;  %s7122_s5 = inlined_call_operand.hbm [shape: f32[24,128], index: 5, kind: output, shape index: {1}]   ;;  %s7123_s6 = inlined_call_operand.hbm [shape: f32[24,128], index: 6, kind: output, shape index: {2}]  }
   0x1   :  { %7148 = sst [smem:[#allocation24_spill]] %s7117_s0 }
   0x2   :  { %12 = vsyncpa [#allocation3], 0 }
   0x3   :  { %14 = vsyncpa [#allocation3 + $0x1], 0 }
   0x4   :  { %15 = vsyncpa [#allocation6], 0 }
   0x5   :  { %17 = vsyncpa [#allocation6 + $0x1], 0 }
   0x6   :  { %18 = vsyncpa [#allocation4], 0 }
   0x7   :  { %20 = vsyncpa [#allocation4 + $0x1], 0 }
   0x8   :  { %21 = vsyncpa [#allocation9], 0 }
   0x9   :  { %23 = vsyncpa [#allocation9 + $0x1], 0  ;;  %s5739_s21 = smov 0   ;;  %s5741_s22 = smov 0  }
   0xa   :  { %s5743_s23 = smov 0   ;;  %s5745_s24 = smov 0  }
   0xb   :  { %s5747_s25 = smov 0   ;;  %s5749_s26 = smov 0  }
   0xc   :  { %s5751_s27 = smov 0  }
   0xd LB: > { %7149 = sst [smem:[#allocation15_spill]] %s5688_s26  ;;  %s5775_s28 = sadd.s32 4294967295, %s5692_s27   ;;  %s5692_s27 = sphi %s5751_s27, %s7194_s27   ;;  %s5688_s26 = sphi %s5749_s26, %s7188_s26   ;;  %s5684_s25 = sphi %s5747_s25, %s7193_s25   ;;  %s5680_s24 = sphi %s5745_s24, %s7192_s24   ;;  %s5676_s23 = sphi %s5743_s23, %s7191_s23   ;;  %s5672_s22 = sphi %s5741_s22, %s7190_s22   ;;  %s5668_s21 = sphi %s5739_s21, %s7189_s21  }
   0xe   : > { %s7124_s29 = sadd.s32 4294967294, %s5692_s27   ;;  %s5779_s30 = sadd.s32 1, %s5692_s27  }
   0xf   : > { %s36_s7 = sadd.s32 1, %s5688_s26  ;;  %s33_s8 = ssub.s32 %s5692_s27, %s5779_s30 }
  0x10   : > { %p43_p0 = scmp.ne.s32.totalorder %s5688_s26, %s5684_s25  ;;  %p34_p1 = scmp.eq.s32.totalorder %s33_s8, 0 }
  0x11   : > { %p7128_p2 = scmp.eq.s32.totalorder %s5692_s27, 0  ;;  %p49_p3 = scmp.ne.s32.totalorder %s5684_s25, %s5680_s24 }
  0x12   : > { %p7127_p4 = scmp.eq.s32.totalorder %s5775_s28, 0  ;;  %p150_p7 = scmp.eq.s32.totalorder %s5775_s28, 2 }
  0x13   : > { %s5791_s9 = scalar_select %p34_p1, %s5688_s26, %s36_s7  }
  0x14   : > { %p5795_p5 = por %p7128_p2, %p43_p0  ;;  %p5801_p6 = por %p7127_p4, %p49_p3 }
  0x15   : > { %7150 = sst [smem:[#allocation16_spill]] %s5791_s9  ;;  %p156_p8 = scmp.eq.s32.totalorder %s7124_s29, 2 }
  0x16   : > { %s7152_s11 = scalar_select %p5801_p6, 1, 0 }
  0x17   : > { %p7126_p9 = scmp.lt.s32.totalorder %s5692_s27, 3  ;;  %p5809_p10 = por %p150_p7, %p43_p0 }
  0x18   : > { %p5813_p11 = por %p156_p8, %p49_p3  ;;  %s231_s14 = sand.u32 1, %s5688_s26  }
  0x19   : > { %s7153_s12 = scalar_select %p5809_p10, 1, 0 }
  0x1a   : > { %s7154_s13 = scalar_select %p5813_p11, 1, 0 }
  0x1b   : > { %s7125_s15 = sshll.u32 %s5692_s27, 11  ;;  %s3940_s16 = sshll.u32 %s231_s14, 7 }
  0x1c   : > { %s7155_s0 = sld [smem:[#allocation24_spill]]  ;;  %s235_s20 = scalar_lea.vmem [#allocation2], %s3940_s16 }
  0x1d   : > { %s242_s7 = sshll.u32 %s235_s20, 4  ;;  %p5830_p12 = pnand %p7126_p9, %p5795_p5  ;;  %s5834_s7 = int_to_ptr.vmem [resolvable:$true] %s242_s7 }
  0x1e   : > { %s5836_s29 = scalar_lea.sflag [#allocation3], %s231_s14 }
  0x1f   : > { %p5479_p0 = pneg %p5830_p12 }
  0x22   : > { %s5824_s19 = scalar_lea.hbm %s7155_s0, %s7125_s15  ;;  %s5482_s18 = scalar_lea.hbm %s7155_s0, 8192 }
  0x23   : > { %s5477_s17 = scalar_lea.hbm %s5824_s19, 2048  ;;  %p5483_p5 = scmp.lt.u32.totalorder %s5824_s19, %s7155_s0 }
  0x24   : > { %p5478_p13 = scmp.ne.s32.totalorder %s5824_s19, %s5477_s17  ;;  %p5484_p7 = scmp.lt.u32.totalorder %s5482_s18, %s5477_s17 }
  0x25   : > { %p5486_p9 = scmp.lt.u32.totalorder %s5477_s17, %s5824_s19 }
  0x26   : > { %p5480_p1 = pnand %p5479_p0, %p5478_p13  ;;  %p5485_p8 = por %p5484_p7, %p5483_p5 }
  0x28   : > { %p5481_p3 = pneg %p5480_p1  ;;  %p5487_p4 = por %p5486_p9, %p5485_p8 }
  0x2a   : > { %p5488_p2 = pnand %p5487_p4, %p5481_p3 }
  0x2c   : > { %5491 = shalt.err (!%p5488_p2)
}
  0x2d   : > { %s5492_s14 = scalar_lea.vmem %s5834_s7, 2048  ;;  %s5694_s10 = smov [#allocation2]  }
  0x2e   : > { %p5493_p13 = scmp.ne.s32.totalorder %s5834_s7, %s5492_s14  ;;  %s5497_s16 = sshll.u32 %s5694_s10, 4  ;;  %s5498_s16 = int_to_ptr.vmem [resolvable:$false] %s5497_s16 }
  0x2f   : > { %s5499_s15 = scalar_lea.vmem %s5498_s16, 4096  ;;  %p5500_p10 = scmp.lt.s32.totalorder %s5834_s7, %s5498_s16 }
  0x30   : > { %p5495_p1 = pnand %p5493_p13, %p5479_p0  ;;  %p5501_p5 = scmp.lt.s32.totalorder %s5499_s15, %s5492_s14 }
  0x32   : > { %p5496_p11 = pneg %p5495_p1  ;;  %p5502_p7 = por %p5501_p5, %p5500_p10 }
  0x34   : > { %p5503_p9 = pnand %p5502_p7, %p5496_p11 }
  0x36   : > { %5506 = shalt.err (!%p5503_p9)
}
  0x37   : > { %s7130_s17 = smov 64   ;;  %s7131_s18 = smov 4  }
  0x38   : > { %5281 = dma.hbm_to_vmem [thread:$0]  (!%p5830_p12), %s5824_s19, 2048, %s5834_s7, %s5836_s29, %s7130_s17, %s7130_s17, %s7131_s18  }
  0x39   : > { %p3946_p2 = scmp.ge.s32.totalorder %s5692_s27, 1  ;;  %p282_p4 = scmp.lt.s32.totalorder %s5692_s27, 4 }
  0x3a   : > { %s3936_s14 = sshll.u32 %s5692_s27, 2  ;;  %s66_s16 = sadd.s32 1, %s5676_s23 }
  0x3b   : > { %p5869_p10 = pnand %p3946_p2, %p282_p4  ;;  %s60_s10 = sadd.s32 4, %s3936_s14 }
  0x3c   : > { %s62_s15 = sadd.s32 4, %s60_s10  ;;  %p73_p11 = scmp.ne.s32.totalorder %s5676_s23, %s5672_s22 }
  0x3d   : > { %s63_s0 = ssub.s32 %s60_s10, %s62_s15  ;;  %p79_p0 = scmp.ne.s32.totalorder %s5672_s22, %s5668_s21 }
  0x3e   : > { %p64_p3 = scmp.eq.s32.totalorder %s63_s0, 0  ;;  %p7158_p8 = scmp.eq.s32.totalorder %s5692_s27, 0 }
  0x3f   : > { %p7159_p1 = scmp.eq.s32.totalorder %s5775_s28, 0  ;;  %s252_s19 = sand.u32 1, %s5676_s23  }
  0x40   : > { %p75_p13 = por %p73_p11, %p7158_p8  ;;  %s3943_s8 = sshll.u32 %s252_s19, 5 }
  0x41   : > { %p5883_p12 = por %p79_p0, %p7159_p1  ;;  %s7161_s17 = sshll.u32 %s5692_s27, 11 }
  0x42   : > { %s5889_s7 = scalar_select %p64_p3, %s5676_s23, %s66_s16  }
  0x43   : > { %s7160_s29 = scalar_select %p5883_p12, 1, 0 }
  0x44   : > { %s3825_s9 = scalar_lea.hbm %s7118_s1, %s7161_s17  ;;  %s256_s0 = scalar_lea.vmem [#allocation5], %s3943_s8 }
  0x45   : > { %s5896_s26 = scalar_lea.hbm %s3825_s9, 2048  ;;  %s265_s21 = sshll.u32 %s256_s0, 4  ;;  %s5898_s21 = int_to_ptr.vmem [resolvable:$true] %s265_s21 }
  0x46   : > { %p7162_p5 = scmp.lt.s32.totalorder %s5692_s27, 3  ;;  %s5906_s16 = scalar_lea.sflag [#allocation6], %s252_s19 }
  0x47   : > { %s5537_s18 = scalar_lea.hbm %s3825_s9, 2560  ;;  %s5512_s8 = scalar_lea.hbm %s7118_s1, 8192 }
  0x48   : > { %p5902_p7 = pnand %p7162_p5, %p75_p13  ;;  %p5508_p9 = scmp.ne.s32.totalorder %s5896_s26, %s5537_s18 }
  0x49   : > { %p5513_p0 = scmp.lt.u32.totalorder %s5896_s26, %s7118_s1  ;;  %p5514_p3 = scmp.lt.u32.totalorder %s5512_s8, %s5537_s18 }
  0x4a   : > { %p5509_p2 = pneg %p5902_p7  ;;  %p5516_p13 = scmp.lt.u32.totalorder %s5537_s18, %s5896_s26 }
  0x4b   : > { %p5515_p8 = por %p5514_p3, %p5513_p0 }
  0x4c   : > { %p5510_p4 = pnand %p5509_p2, %p5508_p9 }
  0x4d   : > { %p5517_p1 = por %p5516_p13, %p5515_p8 }
  0x4e   : > { %p5511_p11 = pneg %p5510_p4 }
  0x50   : > { %p5518_p5 = pnand %p5517_p1, %p5511_p11 }
  0x52   : > { %5521 = shalt.err (!%p5518_p5)
}
  0x53   : > { %s5522_s9 = scalar_lea.vmem %s5898_s21, 512  ;;  %s5697_s19 = smov [#allocation5]  }
  0x54   : > { %p5523_p9 = scmp.ne.s32.totalorder %s5898_s21, %s5522_s9  ;;  %s5527_s17 = sshll.u32 %s5697_s19, 4  ;;  %s5528_s17 = int_to_ptr.vmem [resolvable:$false] %s5527_s17 }
  0x55   : > { %s5529_s15 = scalar_lea.vmem %s5528_s17, 1024  ;;  %p5530_p6 = scmp.lt.s32.totalorder %s5898_s21, %s5528_s17 }
  0x56   : > { %p5525_p4 = pnand %p5523_p9, %p5509_p2  ;;  %p5531_p0 = scmp.lt.s32.totalorder %s5529_s15, %s5522_s9 }
  0x58   : > { %p5526_p12 = pneg %p5525_p4  ;;  %p5532_p3 = por %p5531_p0, %p5530_p6 }
  0x5a   : > { %p5533_p8 = pnand %p5532_p3, %p5526_p12 }
  0x5c   : > { %5536 = shalt.err (!%p5533_p8)
}
  0x5d   : > { %s7164_s18 = smov 4   ;;  %s7165_s8 = smov 64  }
  0x5e   : > { %5284 = dma.hbm_to_vmem [thread:$0]  (!%p5902_p7), %s5896_s26, 512, %s5898_s21, %s5906_s16, %s7165_s8, %s7165_s8, %s7164_s18  }
  0x5f   : > { %286 = sbr.rel (%p5869_p10) target bundleno = 713 (0x2c9), region = 36 }
  0x66   : > { %s5939_s14 = sand.u32 1, %s5684_s25   ;;  %p7166_p6 = scmp.ne.s32.totalorder %s7152_s11, 0 }
  0x67   : > { %s3947_s0 = sshll.u32 %s5939_s14, 7  ;;  %s289_s9 = scalar_lea.sflag [#allocation3], %s5939_s14 }
  0x68   : > { %s5945_s10 = scalar_lea.vmem [#allocation2], %s3947_s0 }
  0x69   : > { %5651 = dma.done.wait (%p7166_p6), %s289_s9, 2048  }
  0x6a   : > { %5653 = vsyncadd (%p7166_p6), %s289_s9, 4294965248  ;;  %s297_s26 = sand.u32 1, %s5672_s22   ;;  %p7167_p10 = scmp.ne.s32.totalorder %s7160_s29, 0 }
  0x6b   : > { %s3948_s20 = sshll.u32 %s297_s26, 5  ;;  %s298_s21 = scalar_lea.sflag [#allocation6], %s297_s26 }
  0x6c   : > { %s5952_s16 = scalar_lea.vmem [#allocation5], %s3948_s20 }
  0x6d   : > { %5655 = dma.done.wait (%p7167_p10), %s298_s21, 512  }
  0x6e   : > { %5657 = vsyncadd (%p7167_p10), %s298_s21, 4294966784  ;;  %v5360_v0 = vld [vmem:[%s7119_s2 + $0x40] sm:$0xff]   ;;  %v5362_v2 = vld [vmem:[%s7119_s2 + $0x48] sm:$0xff]   ;;  %vm486_vm0 = vsmask.f32 7424  ;;  %vm2015_vm2 = vcmask 1045504  }
  0x6f   : > { %v5361_v1 = vld [vmem:[%s7119_s2 + $0x100] sm:$0xff]   ;;  %4564 = vmatprep.subr.bf16.mxu1 %v5360_v0  ;;  %v5363_v3 = vld [vmem:[%s7119_s2 + $0x108] sm:$0xff]   ;;  %v5364_v4 = vld [vmem:[%s7119_s2 + $0x50] sm:$0xff]   ;;  %vm1663_vm1 = vsmask.f32 6400  ;;  %s3952_s19 = sshll.u32 %s5775_s28, 5 }
  0x70   : > { %4756 = vmatprep.subr.bf16.mxu0 %v5361_v1  ;;  %4565 = vmatpush3.bf16.msra.mxu1 %v5360_v0  ;;  %v5365_v5 = vld [vmem:[%s7119_s2 + $0x110] sm:$0xff]   ;;  %v5366_v6 = vld [vmem:[%s7119_s2 + $0x58] sm:$0xff]   ;;  %v5368_v8 = vld [vmem:[%s7119_s2 + $0x60] sm:$0xff]   ;;  %vm2591_vm3 = vsmask.f32 5376  ;;  %vm1087_vm4 = vcmask 1046528  }
  0x71   : > { %4757 = vmatpush3.bf16.msra.mxu0 %v5361_v1  ;;  %4566 = vmatprep.subr.bf16.mxu1 %v5362_v2  ;;  %v5367_v7 = vld [vmem:[%s7119_s2 + $0x118] sm:$0xff]   ;;  %v5369_v9 = vld [vmem:[%s7119_s2 + $0x120] sm:$0xff]   ;;  %v5370_v10 = vld [vmem:[%s7119_s2 + $0x68] sm:$0xff]   ;;  %p355_p12 = scmp.lt.s32.totalorder %s3952_s19, 95  ;;  %vm2943_vm5 = vcmask 1044480   ;;  %s4252_s21 = sshll.u32 %s5775_s28, 11 }
  0x72   : > { %4758 = vmatprep.subr.bf16.mxu0 %v5363_v3  ;;  %v5371_v11 = vld [vmem:[%s7119_s2 + $0x128] sm:$0xff]   ;;  %v5995_v12 = vld [vmem:[%s5945_s10] sm:$0xff]   ;;  %v5372_v14 = vld [vmem:[%s7119_s2 + $0x70] sm:$0xff]   ;;  %s6975_s15 = scalar_lea.hbm %s7121_s4, %s4252_s21  ;;  %s4212_s11 = sshll.u32 %s5775_s28, 7 }
  0x73   : > { %v5998_v13 = vld [vmem:[%s5945_s10 + $0x8] sm:$0xff]   ;;  %v6004_v15 = vld [vmem:[%s5945_s10 + $0x10] sm:$0xff]   ;;  %v488_v16 = vshrl.u32 %v5995_v12, 16  ;;  %v490_v17 = vshll.u32 %v5995_v12, 16  ;;  %v6020_v23 = vld [vmem:[%s5945_s10 + $0x18] sm:$0xff]   ;;  %s7196_s19 = smov (!%p355_p12, %s3952_s19), 95 }
  0x74   : > { %4567 = vmatpush3.bf16.msra.mxu1 %v5362_v2  ;;  %v495_v18 = vshll.u32 %v5998_v13, 16  ;;  %v499_v19 = vshrl.u32 %v5998_v13, 16  ;;  %v5373_v20 = vld [vmem:[%s7119_s2 + $0x130] sm:$0xff]   ;;  %v6014_v21 = vshll.u32 %v6004_v15, 16  ;;  %v6017_v22 = vshrl.u32 %v6004_v15, 16  ;;  %v5374_v34 = vld [vmem:[%s7119_s2 + $0x78] sm:$0xff]  }
  0x75   : > { %4759 = vmatpush3.bf16.msra.mxu0 %v5363_v3  ;;  %4568 = vmatprep.subr.bf16.mxu1 %v5364_v4  ;;  %v492_v24 = vrot.slane %v490_v17, 1  ;;  %v6025_v30 = vshll.u32 %v6020_v23, 16  ;;  %v6028_v33 = vshrl.u32 %v6020_v23, 16  ;;  %v5375_v37 = vld [vmem:[%s7119_s2 + $0x138] sm:$0xff]   ;;  %v5379_v41 = vld [vmem:[%s7119_s2] sm:$0xff]   ;;  %v6058_v50 = vld [vmem:[%s5945_s10 + $0x28] sm:$0xff]  }
  0x76   : > { %4760 = vmatprep.subr.bf16.mxu0 %v5365_v5  ;;  %v497_v25 = vrot.slane %v495_v18, 1  ;;  %v1664_v26 = vrot.slane %v499_v19, 1  ;;  %v1665_v27 = vrot.slane %v495_v18, 2  ;;  %v1667_v28 = vrot.slane %v6017_v22, 1  ;;  %v6044_v42 = vld [vmem:[%s5945_s10 + $0x20] sm:$0xff]   ;;  %v6067_v55 = vld [vmem:[%s5945_s10 + $0x30] sm:$0xff]  }
  0x77   : > { %v1668_v29 = vrot.slane %v6014_v21, 2  ;;  %v493_v31 = vor.u32 %v492_v24, %v488_v16  ;;  %v1672_v36 = vrot.slane %v6025_v30, 2  ;;  %v1671_v39 = vrot.slane %v6028_v33, 1  ;;  %v5381_v45 = vld [vmem:[%s7119_s2 + $0x140] sm:$0xff]   ;;  %v6076_v61 = vld [vmem:[%s5945_s10 + $0x38] sm:$0xff]   ;;  %v5382_v62 = vld [vmem:[%s7119_s2 + $0x148] sm:$0xff]  }
  0x78   : > { %4569 = vmatpush3.bf16.msra.mxu1 %v5364_v4  ;;  %v1666_v32 = vor.u32 %v1665_v27, %v1664_v26  ;;  %v501_v43 = vor.u32 %v499_v19, %v497_v25  ;;  %v505_v44 = vrot.slane %v6014_v21, 1  ;;  %v513_v47 = vrot.slane %v6025_v30, 1  ;;  %v5389_v16 = vld [vmem:[%s7119_s2 + $0x10] sm:$0xff]   ;;  %v6109_v18 = vld [vmem:[%s5945_s10 + $0x40] sm:$0xff]   ;;  %v5387_v26 = vld [vmem:[%s7119_s2 + $0x158] sm:$0xff]   ;;  %s3953_s8 = sshll.u32 %s7196_s19, 3 }
  0x79   : > { %4761 = vmatpush3.bf16.msra.mxu0 %v5365_v5  ;;  %4570 = vmatprep.subr.bf16.mxu1 %v5366_v6  ;;  %v1669_v35 = vor.u32 %v1668_v29, %v1667_v28  ;;  %v498_v38 = vsel %vm486_vm0, %v493_v31, %v497_v25  ;;  %v1673_v46 = vor.u32 %v1672_v36, %v1671_v39  ;;  %v6052_v48 = vshll.u32 %v6044_v42, 16  ;;  %v5384_v5 = vld [vmem:[%s7119_s2 + $0x8] sm:$0xff]   ;;  %v5386_v19 = vld [vmem:[%s7119_s2 + $0x150] sm:$0xff]   ;;  %v5394_v39 = vld [vmem:[%s7119_s2 + $0x18] sm:$0xff]   ;;  %s6521_s29 = scalar_lea.vmem %s7120_s3, %s3953_s8  ;;  %s3715_s26 = scalar_lea.sflag [#allocation4], %s5939_s14 }
  0x7a   : > { %4762 = vmatprep.subr.bf16.mxu0 %v5367_v7  ;;  %4580 = vmatprep.mubr.bf16.mxu1 %v498_v38  ;;  %v6055_v49 = vshrl.u32 %v6044_v42, 16  ;;  %v509_v51 = vor.u32 %v6017_v22, %v505_v44  ;;  %v6064_v54 = vshll.u32 %v6058_v50, 16  ;;  %v506_v56 = vsel %vm486_vm0, %v501_v43, %v505_v44  ;;  %p7182_p2 = scmp.ne.s32.totalorder %s7153_s12, 0  ;;  %s5699_s20 = smov [#allocation7]  }
  0x7b   : > { %v1670_v40 = vsel %vm1663_vm1, %v1666_v32, %v1669_v35  ;;  %v1676_v53 = vrot.slane %v6052_v48, 2  ;;  %v6071_v57 = vshrl.u32 %v6058_v50, 16  ;;  %v1674_v58 = vsel %vm1663_vm1, %v1669_v35, %v1673_v46  ;;  %s5542_s21 = sshll.u32 %s5699_s20, 4  ;;  %s5543_s21 = int_to_ptr.vmem [resolvable:$false] %s5542_s21 }
  0x7c   : > { %4571 = vmatpush3.bf16.msra.mxu1 %v5366_v6  ;;  %4772 = vmatprep.mubr.bf16.mxu0 %v1670_v40  ;;  %v1675_v52 = vrot.slane %v6055_v49, 1  ;;  %v1680_v60 = vrot.slane %v6064_v54, 2  ;;  %v514_v63 = vsel %vm486_vm0, %v509_v51, %v513_v47  ;;  %v6084_v1 = vshll.u32 %v6067_v55, 16 }
  0x7d   : > { %4763 = vmatpush3.bf16.msra.mxu0 %v5367_v7  ;;  %4572 = vmatprep.subr.bf16.mxu1 %v5368_v8  ;;  %v1679_v0 = vrot.slane %v6071_v57, 1  ;;  %v6087_v2 = vshrl.u32 %v6067_v55, 16  ;;  %v521_v4 = vrot.slane %v6052_v48, 1  ;;  %v517_v6 = vor.u32 %v6028_v33, %v513_v47  ;;  %v5391_v47 = vld [vmem:[%s7119_s2 + $0x160] sm:$0xff]  }
  0x7e   : > { %4764 = vmatprep.subr.bf16.mxu0 %v5369_v9  ;;  %v1677_v59 = vor.u32 %v1676_v53, %v1675_v52  ;;  %v6106_v17 = vshll.u32 %v6076_v61, 16  ;;  %v6115_v24 = vshll.u32 %v6109_v18, 16  ;;  %v6123_v28 = vshrl.u32 %v6109_v18, 16  ;;  %v5399_v52 = vld [vmem:[%s7119_s2 + $0x20] sm:$0xff]  }
  0x7f   : > { %v1683_v7 = vrot.slane %v6087_v2, 1  ;;  %v522_v25 = vsel %vm486_vm0, %v517_v6, %v521_v4  ;;  %v537_v36 = vrot.slane %v6084_v1, 1 }
  0x80   : > { %4573 = vmatpush3.bf16.msra.mxu1 %v5368_v8  ;;  %v1678_v3 = vsel %vm1663_vm1, %v1673_v46, %v1677_v59  ;;  %v1684_v8 = vrot.slane %v6084_v1, 2  ;;  %v1688_v32 = vrot.slane %v6106_v17, 2  ;;  %v1692_v38 = vrot.slane %v6115_v24, 2 }
  0x81   : > { %4765 = vmatpush3.bf16.msra.mxu0 %v5369_v9  ;;  %4574 = vmatprep.subr.bf16.mxu1 %v5370_v10  ;;  %v6098_v9 = vshrl.u32 %v6076_v61, 16  ;;  %v541_v44 = vor.u32 %v6087_v2, %v537_v36 }
  0x82   : > { %4766 = vmatprep.subr.bf16.mxu0 %v5371_v11 }
  0x83   : > { %v1687_v27 = vrot.slane %v6098_v9, 1 }
  0x84   : > { %4575 = vmatpush3.bf16.msra.mxu1 %v5370_v10  ;;  %v1681_v10 = vor.u32 %v1680_v60, %v1679_v0  ;;  %v6163_v0 = vld [vmem:[%s5945_s10 + $0x50] sm:$0xff]  }
  0x85   : > { %4767 = vmatpush3.bf16.msra.mxu0 %v5371_v11  ;;  %4576 = vmatprep.subr.bf16.mxu1 %v5372_v14  ;;  %v525_v11 = vor.u32 %v6055_v49, %v521_v4  ;;  %v1689_v43 = vor.u32 %v1688_v32, %v1687_v27  ;;  %v5403_v4 = vld [vmem:[%s7119_s2 + $0x28] sm:$0xff]   ;;  %v5397_v32 = vld [vmem:[%s7119_s2 + $0x178] sm:$0xff]  }
  0x86   : > { %4768 = vmatprep.subr.bf16.mxu0 %v5373_v20  ;;  %v1682_v29 = vsel %vm1663_vm1, %v1677_v59, %v1681_v10 }
  0x88   : > { %4577 = vmatpush3.bf16.msra.mxu1 %v5372_v14  ;;  %v529_v14 = vrot.slane %v6064_v54, 1 }
  0x89   : > { %4769 = vmatpush3.bf16.msra.mxu0 %v5373_v20  ;;  %4578 = vmatprep.subr.bf16.mxu1 %v5374_v34  ;;  %v1685_v20 = vor.u32 %v1684_v8, %v1683_v7 }
  0x8a   : > { %4770 = vmatprep.subr.bf16.mxu0 %v5375_v37  ;;  %v530_v31 = vsel %vm486_vm0, %v525_v11, %v529_v14  ;;  %v533_v40 = vor.u32 %v6071_v57, %v529_v14  ;;  %v5396_v11 = vld [vmem:[%s7119_s2 + $0x170] sm:$0xff]   ;;  %v2016_v14 = vrot.slane %v5998_v13, 2 }
  0x8b   : > { %v1686_v35 = vsel %vm1663_vm1, %v1681_v10, %v1685_v20  ;;  %v6175_v10 = vld [vmem:[%s5945_s10 + $0x58] sm:$0xff]  }
  0x8c   : > { %4579 = vmatpush3.bf16.msra.mxu1 %v5374_v34  ;;  %v6129_v34 = vld [vmem:[%s5945_s10 + $0x48] sm:$0xff]   ;;  %v538_v53 = vsel %vm486_vm0, %v533_v40, %v537_v36  ;;  %v6203_v36 = vld [vmem:[%s5945_s10 + $0x60] sm:$0xff]   ;;  %v2019_v40 = vrot.slane %v6020_v23, 2 }
  0x8d   : > { %4771 = vmatpush3.bf16.msra.mxu0 %v5375_v37  ;;  %4612 = vmatprep.subr.bf16.mxu1 %v5379_v41  ;;  %v1691_v37 = vrot.slane %v6123_v28, 1  ;;  %v6145_v46 = vshrl.u32 %v6129_v34, 16 }
  0x8e   : > { %4804 = vmatprep.subr.bf16.mxu0 %v5381_v45 }
  0x8f   : > { %4581 = vmatmul.mubr.bf16.vlgmr.msra.gmra.mrb[0].mxu1 %v506_v56  ;;  %v1693_v51 = vor.u32 %v1692_v38, %v1691_v37  ;;  %v1690_v56 = vsel %vm1663_vm1, %v1685_v20, %v1689_v43  ;;  %v1695_v60 = vrot.slane %v6145_v46, 1  ;;  %v5407_v20 = vld [vmem:[%s7119_s2 + $0x30] sm:$0xff]   ;;  %v5412_v38 = vld [vmem:[%s7119_s2 + $0x38] sm:$0xff]  }
  0x90   : > { %4773 = vmatmul.mubr.bf16.vlgmr.msra.gmra.mrb[0].mxu0 %v1674_v58  ;;  %4613 = vmatpush3.bf16.msra.mxu1 %v5379_v41  ;;  %v545_v41 = vrot.slane %v6106_v17, 1  ;;  %v5392_v58 = vld [vmem:[%s7119_s2 + $0x168] sm:$0xff]  }
  0x91   : > { %4805 = vmatpush3.bf16.msra.mxu0 %v5381_v45  ;;  %4584 = vmatprep.mubr.bf16.mxu1 %v514_v63  ;;  %v6142_v45 = vshll.u32 %v6129_v34, 16  ;;  %v1694_v63 = vsel %vm1663_vm1, %v1689_v43, %v1693_v51 }
  0x92   : > { %4806 = vmatprep.subr.bf16.mxu0 %v5382_v62  ;;  %4776 = vmatprep.mubr.bf16.mxu0 %v1678_v3  ;;  %v546_v59 = vsel %vm486_vm0, %v541_v44, %v545_v41  ;;  %v553_v3 = vrot.slane %v6115_v24, 1  ;;  %v6214_v44 = vld [vmem:[%s5945_s10 + $0x68] sm:$0xff]  }
  0x93   : > { %4614 = vmatprep.subr.bf16.mxu1 %v5384_v5  ;;  %v561_v8 = vrot.slane %v6142_v45, 1 }
  0x94   : > { %4615 = vmatpush3.bf16.msra.mxu1 %v5384_v5  ;;  %v549_v5 = vor.u32 %v6098_v9, %v545_v41  ;;  %v557_v7 = vor.u32 %v6123_v28, %v553_v3 }
  0x95   : > { %4807 = vmatpush3.bf16.msra.mxu0 %v5382_v62  ;;  %4616 = vmatprep.subr.bf16.mxu1 %v5389_v16  ;;  %v1696_v62 = vrot.slane %v6142_v45, 2 }
  0x96   : > { %4808 = vmatprep.subr.bf16.mxu0 %v5386_v19  ;;  %v562_v27 = vsel %vm486_vm0, %v557_v7, %v561_v8  ;;  %v6250_v7 = vld [vmem:[%s5945_s10 + $0x70] sm:$0xff]  }
  0x97   : > { %4585 = vmatmul.mubr.bf16.gmra.mrb[4].mxu1 %v522_v25  ;;  %v6170_v6 = vor.u32 %v1696_v62, %v1695_v60  ;;  %v554_v25 = vsel %vm486_vm0, %v549_v5, %v553_v3  ;;  %v6237_v62 = vshrl.u32 %v6203_v36, 16 }
  0x98   : > { %4777 = vmatmul.mubr.bf16.gmra.mrb[4].mxu0 %v1682_v29  ;;  %4588 = vmatprep.mubr.bf16.mxu1 %v530_v31  ;;  %v6193_v29 = vshrl.u32 %v6163_v0, 16  ;;  %v6196_v31 = vshll.u32 %v6175_v10, 16 }
  0x99   : > { %4809 = vmatpush3.bf16.msra.mxu0 %v5386_v19  ;;  %4780 = vmatprep.mubr.bf16.mxu0 %v1686_v35  ;;  %7168 = vst [vmem:[#allocation17_spill] sm:$0xff] %v6170_v6  ;;  %v6183_v19 = vshll.u32 %v6163_v0, 16 }
  0x9a   : > { %4810 = vmatprep.subr.bf16.mxu0 %v5387_v26  ;;  %4617 = vmatpush3.bf16.msra.mxu1 %v5389_v16  ;;  %v2017_v16 = vrot.slane %v6004_v15, 2  ;;  %v577_v43 = vrot.slane %v6196_v31, 1 }
  0x9b   : > { %4618 = vmatprep.subr.bf16.mxu1 %v5394_v39  ;;  %v569_v37 = vrot.slane %v6183_v19, 1 }
  0x9c   : > { %v2018_v35 = vsel %vm2015_vm2, %v2016_v14, %v2017_v16  ;;  %v2023_v14 = vrot.slane %v6058_v50, 2 }
  0x9d   : > { %4811 = vmatpush3.bf16.msra.mxu0 %v5387_v26  ;;  %v1698_v26 = vsel %vm1663_vm1, %v1693_v51, %v6170_v6  ;;  %v573_v41 = vor.u32 %v6193_v29, %v569_v37  ;;  %v2021_v51 = vrot.slane %v6044_v42, 2 }
  0x9e   : > { %4812 = vmatprep.subr.bf16.mxu0 %v5391_v47  ;;  %4619 = vmatpush3.bf16.msra.mxu1 %v5394_v39  ;;  %v565_v39 = vor.u32 %v6145_v46, %v561_v8 }
  0x9f   : > { %4589 = vmatmul.mubr.bf16.gmra.mrb[8].mxu1 %v538_v53  ;;  %4620 = vmatprep.subr.bf16.mxu1 %v5399_v52  ;;  %v6226_v53 = vld [vmem:[%s7119_s2 + $0x80] sm:$0xff]   ;;  %v578_v60 = vsel %vm486_vm0, %v573_v41, %v577_v43  ;;  %v6243_v3 = vsel %vm2015_vm2, %v2019_v40, %v2021_v51 }
  0xa0   : > { %4781 = vmatmul.mubr.bf16.gmra.mrb[8].mxu0 %v1690_v56  ;;  %4592 = vmatprep.mubr.bf16.mxu1 %v546_v59  ;;  %v570_v56 = vsel %vm486_vm0, %v565_v39, %v569_v37  ;;  %v6233_v59 = vsel %vm2015_vm2, %v2017_v16, %v2019_v40  ;;  %v6274_v37 = vshrl.u32 %v6250_v7, 16  ;;  %v6280_v39 = vsel %vm2015_vm2, %v2021_v51, %v2023_v14  ;;  %v426_v41 = vld [vmem:[%s5952_s16] sm:$0xf] }
  0xa1   : > { %4813 = vmatpush3.bf16.msra.mxu0 %v5391_v47  ;;  %4784 = vmatprep.mubr.bf16.mxu0 %v1694_v63  ;;  %v5400_v47 = vld [vmem:[%s7119_s2 + $0x180] sm:$0xff]   ;;  %v6240_v63 = vshll.u32 %v6214_v44, 16 }
  0xa2   : > { %4814 = vmatprep.subr.bf16.mxu0 %v5392_v58  ;;  %4621 = vmatpush3.bf16.msra.mxu1 %v5399_v52  ;;  %v6221_v52 = vshll.u32 %v6203_v36, 16  ;;  %7172 = vst [vmem:[#allocation21_spill] sm:$0xff] %v6274_v37 }
  0xa3   : > { %4622 = vmatprep.subr.bf16.mxu1 %v5403_v4  ;;  %7169 = vst [vmem:[#allocation18_spill] sm:$0xff] %v6240_v63 }
  0xa4   : > { %v585_v5 = vrot.slane %v6221_v52, 1 }
  0xa5   : > { %4815 = vmatpush3.bf16.msra.mxu0 %v5392_v58  ;;  %v6230_v58 = vshrl.u32 %v6175_v10, 16 }
  0xa6   : > { %4816 = vmatprep.subr.bf16.mxu0 %v5396_v11  ;;  %4623 = vmatpush3.bf16.msra.mxu1 %v5403_v4  ;;  %v5404_v4 = vld [vmem:[%s7119_s2 + $0x188] sm:$0xff]   ;;  %v589_v16 = vor.u32 %v6237_v62, %v585_v5 }
  0xa7   : > { %4593 = vmatmul.mubr.bf16.gmra.mrb[12].mxu1 %v554_v25  ;;  %4624 = vmatprep.subr.bf16.mxu1 %v5407_v20  ;;  %v581_v8 = vor.u32 %v6230_v58, %v577_v43  ;;  %v2025_v25 = vrot.slane %v6067_v55, 2 }
  0xa8   : > { %4785 = vmatmul.mubr.bf16.gmra.mrb[12].mxu0 %v1698_v26  ;;  %4596 = vmatprep.mubr.bf16.mxu1 %v562_v27  ;;  %v5408_v26 = vld [vmem:[%s7119_s2 + $0x190] sm:$0xff]   ;;  %v6267_v27 = vshrl.u32 %v6214_v44, 16 }
  0xa9   : > { %4817 = vmatpush3.bf16.msra.mxu0 %v5396_v11  ;;  %4820 = vmatprep.mubr.bf16.mxu0 %v2018_v35  ;;  %v6256_v11 = vld [vmem:[%s5945_s10 + $0x78] sm:$0xff]   ;;  %v586_v35 = vsel %vm486_vm0, %v581_v8, %v585_v5  ;;  %v6285_v43 = vsel %vm2015_vm2, %v2023_v14, %v2025_v25  ;;  %v427_v14 = vld [vmem:[%s5952_s16 + $0x4] sm:$0xf] }
  0xaa   : > { %4818 = vmatprep.subr.bf16.mxu0 %v5397_v32  ;;  %4625 = vmatpush3.bf16.msra.mxu1 %v5407_v20  ;;  %v593_v20 = vrot.slane %v6240_v63, 1  ;;  %7170 = vst [vmem:[#allocation19_spill] sm:$0xff] %v6267_v27 }
  0xab   : > { %4626 = vmatprep.subr.bf16.mxu1 %v5412_v38 }
  0xac   : > { %v594_v40 = vsel %vm486_vm0, %v589_v16, %v593_v20  ;;  %v597_v51 = vor.u32 %v6267_v27, %v593_v20  ;;  %v2029_v16 = vrot.slane %v6109_v18, 2  ;;  %v5415_v20 = vld [vmem:[%s7119_s2 + $0x1a0] sm:$0xff]   ;;  %v6320_v27 = vcombine.low %v426_v41, %v427_v14 }
  0xad   : > { %4819 = vmatpush3.bf16.msra.mxu0 %v5397_v32  ;;  %v6270_v32 = vshll.u32 %v6250_v7, 16  ;;  %v2596_v14 = vrot.slane %v6025_v30, 3  ;;  %v2599_v30 = vrot.slane %v6055_v49, 2  ;;  %v2604_v49 = vrot.slane %v6064_v54, 3 }
  0xae   : > { %4852 = vmatprep.subr.bf16.mxu0 %v5400_v47  ;;  %4627 = vmatpush3.bf16.msra.mxu1 %v5412_v38  ;;  %v6277_v38 = vshll.u32 %v6256_v11, 16 }
  0xaf   : > { %4597 = vmatmul.mubr.bf16.gmra.mrb[16].mxu1 %v570_v56  ;;  %4660 = vmatprep.subr.bf16.mxu1 %v6226_v53  ;;  %7171 = vst [vmem:[#allocation20_spill] sm:$0xff] %v6270_v32  ;;  %v601_v56 = vrot.slane %v6270_v32, 1  ;;  %v6314_v32 = vld [vmem:[%s5952_s16 + $0x8] sm:$0xf] }
  0xb0   : > { %4821 = vmatmul.mubr.bf16.vlgmr.msra.gmra.mrb[0].mxu0 %v6233_v59  ;;  %4600 = vmatprep.mubr.bf16.mxu1 %v578_v60  ;;  %7173 = vst [vmem:[#allocation22_spill] sm:$0xff] %v6277_v38  ;;  %v6293_v60 = vcombine.low %v426_v41, %v426_v41  ;;  %v609_v8 = vrot.slane %v6277_v38, 1 }
  0xb1   : > { %4853 = vmatpush3.bf16.msra.mxu0 %v5400_v47  ;;  %4824 = vmatprep.mubr.bf16.mxu0 %v6243_v3  ;;  %v5413_v47 = vld [vmem:[%s7119_s2 + $0x198] sm:$0xff]   ;;  %v605_v5 = vor.u32 %v6274_v37, %v601_v56  ;;  %v2592_v37 = vrot.slane %v6017_v22, 2 }
  0xb2   : > { %4854 = vmatprep.subr.bf16.mxu0 %v5404_v4 }
  0xb3   : > { %v610_v38 = vsel %vm486_vm0, %v605_v5, %v609_v8  ;;  %v2595_v5 = vrot.slane %v6028_v33, 2  ;;  %v5419_v33 = vld [vmem:[%s7119_s2 + $0x1b0] sm:$0xff]  }
  0xb5   : > { %4855 = vmatpush3.bf16.msra.mxu0 %v5404_v4  ;;  %v2027_v4 = vrot.slane %v6076_v61, 2 }
  0xb6   : > { %4856 = vmatprep.subr.bf16.mxu0 %v5408_v26 }
  0xb7   : > { %4601 = vmatmul.mubr.bf16.gmra.mrb[20].mxu1 %v586_v35  ;;  %v6305_v35 = vshrl.u32 %v6256_v11, 16  ;;  %v6310_v6 = vsel %vm2015_vm2, %v2025_v25, %v2027_v4  ;;  %v6318_v63 = vsel %vm2015_vm2, %v2027_v4, %v2029_v16  ;;  %v2593_v25 = vrot.slane %v6014_v21, 3 }
  0xb8   : > { %4825 = vmatmul.mubr.bf16.gmra.mrb[4].mxu0 %v6280_v39  ;;  %4604 = vmatprep.mubr.bf16.mxu1 %v594_v40  ;;  %v602_v40 = vsel %vm486_vm0, %v597_v51, %v601_v56  ;;  %v5417_v56 = vld [vmem:[%s7119_s2 + $0x1a8] sm:$0xff]   ;;  %v2031_v21 = vrot.slane %v6129_v34, 2 }
  0xb9   : > { %4828 = vmatprep.mubr.bf16.mxu0 %v6285_v43  ;;  %4857 = vmatpush3.bf16.msra.mxu0 %v5408_v26  ;;  %7174 = vst [vmem:[#allocation23_spill] sm:$0xff] %v6305_v35  ;;  %v615_v26 = vshll.u32 %v6293_v60, 16  ;;  %v613_v51 = vor.u32 %v6305_v35, %v609_v8  ;;  %v2594_v4 = vor.u32 %v2593_v25, %v2592_v37 }
  0xba   : > { %4858 = vmatprep.subr.bf16.mxu0 %v5413_v47  ;;  %v2597_v37 = vor.u32 %v2596_v14, %v2595_v5  ;;  %v6357_v35 = vsel %vm2015_vm2, %v2029_v16, %v2031_v21  ;;  %v2603_v5 = vrot.slane %v6071_v57, 2  ;;  %v2607_v14 = vrot.slane %v6087_v2, 2 }
  0xbb   : > { %v617_v22 = vrot.slane %v615_v26, 1  ;;  %v2035_v2 = vrot.slane %v6175_v10, 2 }
  0xbc   : > { %v6353_v25 = vsel %vm2591_vm3, %v2594_v4, %v2597_v37  ;;  %v2605_v16 = vor.u32 %v2604_v49, %v2603_v5 }
  0xbd   : > { %4859 = vmatpush3.bf16.msra.mxu0 %v5413_v47  ;;  %v429_v47 = vld [vmem:[%s5952_s16 + $0xc] sm:$0xf]  ;;  %v618_v26 = vsel %vm486_vm0, %v613_v51, %v617_v22  ;;  %v5422_v22 = vld [vmem:[%s7119_s2 + $0x1b8] sm:$0xff]  }
  0xbe   : > { %4860 = vmatprep.subr.bf16.mxu0 %v5415_v20  ;;  %v6331_v41 = vcombine.low %v6314_v32, %v429_v47  ;;  %v2600_v47 = vrot.slane %v6052_v48, 3  ;;  %v2608_v48 = vrot.slane %v6084_v1, 3 }
  0xbf   : > { %4605 = vmatmul.mubr.bf16.gmra.mrb[24].mxu1 %v602_v40  ;;  %v2033_v40 = vrot.slane %v6163_v0, 2 }
  0xc0   : > { %4829 = vmatmul.mubr.bf16.gmra.mrb[8].mxu0 %v6310_v6  ;;  %4608 = vmatprep.mubr.bf16.mxu1 %v610_v38  ;;  %v6341_v38 = vrot.slane %v6320_v27, 2  ;;  %v2327_v8 = vrot.slane %v6331_v41, 2  ;;  %v2601_v4 = vor.u32 %v2600_v47, %v2599_v30  ;;  %v2609_v57 = vor.u32 %v2608_v48, %v2607_v14 }
  0xc1   : > { %4832 = vmatprep.mubr.bf16.mxu0 %v6318_v63  ;;  %4861 = vmatpush3.bf16.msra.mxu0 %v5415_v20  ;;  %v6362_v51 = vsel %vm2015_vm2, %v2031_v21, %v2033_v40  ;;  %v2612_v21 = vrot.slane %v6106_v17, 3  ;;  %v2037_v30 = vrot.slane %v6203_v36, 2  ;;  %v2620_v47 = vrot.slane %v6142_v45, 3 }
  0xc2   : > { %4862 = vmatprep.subr.bf16.mxu0 %v5417_v56  ;;  %v6350_v20 = vsel %vm2015_vm2, %v6341_v38, %v2327_v8  ;;  %v6373_v54 = vsel %vm2591_vm3, %v2597_v37, %v2601_v4  ;;  %v6379_v1 = vsel %vm2591_vm3, %v2601_v4, %v2605_v16  ;;  %v6389_v17 = vsel %vm2591_vm3, %v2605_v16, %v2609_v57 }
  0xc3   : > { %v6398_v49 = vsel %vm2015_vm2, %v2033_v40, %v2035_v2  ;;  %v6403_v14 = vsel %vm2015_vm2, %v2035_v2, %v2037_v30  ;;  %v2039_v40 = vrot.slane %v6214_v44, 2  ;;  %v2043_v16 = vrot.slane %v6256_v11, 2  ;;  %v5427_v2 = vld [vmem:[%s7119_s2 + $0xb0] sm:$0xff]  }
  0xc5   : > { %4863 = vmatpush3.bf16.msra.mxu0 %v5417_v56  ;;  %v2611_v56 = vrot.slane %v6098_v9, 2  ;;  %v2615_v9 = vrot.slane %v6123_v28, 2  ;;  %v6427_v48 = vsel %vm2015_vm2, %v2037_v30, %v2039_v40 }
  0xc6   : > { %4864 = vmatprep.subr.bf16.mxu0 %v5419_v33 }
  0xc7   : > { %4609 = vmatmul.mubr.bf16.gmra.mrb[28].mxu1 %v618_v26  ;;  %v2613_v37 = vor.u32 %v2612_v21, %v2611_v56  ;;  %v2616_v26 = vrot.slane %v6115_v24, 3  ;;  %v5416_v24 = vld [vmem:[%s7119_s2 + $0x88] sm:$0xff]   ;;  %v5423_v56 = vld [vmem:[%s7119_s2 + $0xa0] sm:$0xff]  }
  0xc8   : > { %4833 = vmatmul.mubr.bf16.gmra.mrb[12].mxu0 %v6357_v35  ;;  %4628 = vmatprep.mubr.bf16.mxu1 %v5995_v12  ;;  %v6386_v12 = vld [vmem:[%s7119_s2 + $0x1c0] sm:$0xff]   ;;  %v5425_v21 = vld [vmem:[%s7119_s2 + $0xa8] sm:$0xff]  }
  0xc9   : > { %4836 = vmatprep.mubr.bf16.mxu0 %v6362_v51  ;;  %4865 = vmatpush3.bf16.msra.mxu0 %v5419_v33  ;;  %v2619_v33 = vrot.slane %v6145_v46, 2  ;;  %v6395_v28 = vsel %vm2591_vm3, %v2609_v57, %v2613_v37  ;;  %v2617_v5 = vor.u32 %v2616_v26, %v2615_v9 }
  0xca   : > { %4866 = vmatprep.subr.bf16.mxu0 %v5422_v22 }
  0xcb   : > { %v6400_v4 = vor.u32 %v2620_v47, %v2619_v33  ;;  %v6410_v45 = vsel %vm2591_vm3, %v2613_v37, %v2617_v5  ;;  %v6525_v37 = vld [vmem:[%s5945_s10 + $0x10] sm:$0xff]   ;;  %v3234_v33 = vld [vmem:[%s6521_s29] sm:$0xff] }
  0xcc   : > { %v1091_v26 = vrot.slane %v6525_v37, 1  ;;  %v3236_v47 = vld [vmem:[%s6521_s29 + $0x10] sm:$0xff] }
  0xcd   : > { %4867 = vmatpush3.bf16.msra.mxu0 %v5422_v22  ;;  %v6415_v46 = vsel %vm2591_vm3, %v2617_v5, %v6400_v4  ;;  %v5418_v22 = vld [vmem:[%s7119_s2 + $0x90] sm:$0xff]   ;;  %v6532_v5 = vld [vmem:[%s5945_s10 + $0x18] sm:$0xff]  }
  0xce   : > { %4900 = vmatprep.subr.bf16.mxu0 %v6386_v12 }
  0xcf   : > { %4629 = vmatmul.mubr.bf16.vlgmr.msra.gmra.mrb[0].mxu1 %v5998_v13  ;;  %v2041_v13 = vrot.slane %v6250_v7, 2 }
  0xd0   : > { %4837 = vmatmul.mubr.bf16.gmra.mrb[16].mxu0 %v6398_v49  ;;  %4661 = vmatpush3.bf16.msra.mxu1 %v6226_v53 }
  0xd1   : > { %4632 = vmatprep.mubr.bf16.mxu1 %v6004_v15  ;;  %4840 = vmatprep.mubr.bf16.mxu0 %v6403_v14  ;;  %v6430_v53 = vsel %vm2015_vm2, %v2039_v40, %v2041_v13  ;;  %v5420_v15 = vld [vmem:[%s7119_s2 + $0x98] sm:$0xff]   ;;  %v6444_v57 = vsel %vm2015_vm2, %v2041_v13, %v2043_v16  ;;  %v5698_v40 = vmov 0  }
  0xd2   : > { %4662 = vmatprep.subr.bf16.mxu1 %v5416_v24  ;;  %5358 = vset.pattern.permute.xlu0 %v5698_v40 }
  0xd3   : > { %3268 = vperm.xlu0 %5358, %v3234_v33   ;;  %5359 = vset.pattern.permute.xlu1 %v5698_v40  ;;  %v1724_v33 = vshrl.u32 %v6320_v27, 16 }
  0xd4   : > { %4663 = vmatpush3.bf16.msra.mxu1 %v5416_v24  ;;  %v1093_v24 = vrot.slane %v6532_v5, 1  ;;  %3278 = vperm.xlu1 %5359, %v3236_v47   ;;  %v1727_v47 = vshll.u32 %v6320_v27, 16 }
  0xd5   : > { %4664 = vmatprep.subr.bf16.mxu1 %v5418_v22 }
  0xd6   : > { %v6545_v13 = vsel %vm1087_vm4, %v1091_v26, %v1093_v24 }
  0xd7   : > { %4633 = vmatmul.mubr.bf16.gmra.mrb[4].mxu1 %v6020_v23  ;;  %v6448_v23 = vcombine.low %v6314_v32, %v6314_v32 }
  0xd8   : > { %4841 = vmatmul.mubr.bf16.gmra.mrb[20].mxu0 %v6427_v48  ;;  %4636 = vmatprep.mubr.bf16.mxu1 %v6044_v42  ;;  %v6452_v42 = vsel %vm2015_vm2, %v2043_v16, %v6341_v38  ;;  %v6555_v16 = vld [vmem:[%s5945_s10 + $0x20] sm:$0xff]  }
  0xd9   : > { %4844 = vmatprep.mubr.bf16.mxu0 %v6430_v53  ;;  %4665 = vmatpush3.bf16.msra.mxu1 %v5418_v22  ;;  %v2047_v32 = vrot.slane %v6448_v23, 2  ;;  %v3235_v22 = vld [vmem:[%s6521_s29 + $0x8] sm:$0xff] }
  0xda   : > { %4666 = vmatprep.subr.bf16.mxu1 %v5420_v15  ;;  %3273 = vperm.xlu0 %5358, %v3235_v22   ;;  %v3245_v22 = vld [vmem:[%s6521_s29 + $0x58] sm:$0xff] }
  0xdb   : > { %v2048_v9 = vsel %vm2015_vm2, %v6341_v38, %v2047_v32  ;;  %v5426_v38 = vld [vmem:[%s7119_s2 + $0x1c8] sm:$0xff]   ;;  %v3238_v32 = vld [vmem:[%s6521_s29 + $0x20] sm:$0xff] }
  0xdd   : > { %4667 = vmatpush3.bf16.msra.mxu1 %v5420_v15  ;;  %v5433_v15 = vld [vmem:[%s7119_s2 + $0xc8] sm:$0xff]  }
  0xde   : > { %4668 = vmatprep.subr.bf16.mxu1 %v5423_v56  ;;  %3288 = vperm.xlu0 %5358, %v3238_v32   ;;  %v1105_v32 = vrot.slane %v6129_v34, 1 }
  0xdf   : > { %4637 = vmatmul.mubr.bf16.gmra.mrb[8].mxu1 %v6058_v50  ;;  %v5429_v50 = vld [vmem:[%s7119_s2 + $0xb8] sm:$0xff]  }
  0xe0   : > { %4845 = vmatmul.mubr.bf16.gmra.mrb[24].mxu0 %v6444_v57  ;;  %4640 = vmatprep.mubr.bf16.mxu1 %v6067_v55  ;;  %v6476_v55 = vld [vmem:[%s7119_s2 + $0xc0] sm:$0xff]  }
  0xe1   : > { %4848 = vmatprep.mubr.bf16.mxu0 %v6452_v42  ;;  %4669 = vmatpush3.bf16.msra.mxu1 %v5423_v56  ;;  %v1095_v56 = vrot.slane %v6555_v16, 1 }
  0xe2   : > { %4670 = vmatprep.subr.bf16.mxu1 %v5425_v21 }
  0xe5   : > { %4671 = vmatpush3.bf16.msra.mxu1 %v5425_v21  ;;  %v3237_v21 = vld [vmem:[%s6521_s29 + $0x18] sm:$0xff] }
  0xe6   : > { %4672 = vmatprep.subr.bf16.mxu1 %v5427_v2  ;;  %3283 = vperm.xlu1 %5359, %v3237_v21   ;;  %v1729_v21 = vrot.slane %v1727_v47, 2 }
  0xe7   : > { %4641 = vmatmul.mubr.bf16.gmra.mrb[12].mxu1 %v6076_v61  ;;  %v5428_v61 = vld [vmem:[%s7119_s2 + $0x1d0] sm:$0xff]  }
  0xe8   : > { %4849 = vmatmul.mubr.bf16.gmra.mrb[28].mxu0 %v2048_v9  ;;  %4644 = vmatprep.mubr.bf16.mxu1 %v6109_v18  ;;  %v5430_v18 = vld [vmem:[%s7119_s2 + $0x1d8] sm:$0xff]  }
  0xe9   : > { %4868 = vmatprep.mubr.bf16.mxu0 %v6233_v59  ;;  %4673 = vmatpush3.bf16.msra.mxu1 %v5427_v2  ;;  %v5432_v59 = vld [vmem:[%s7119_s2 + $0x1e0] sm:$0xff]   ;;  %v6563_v2 = vld [vmem:[%s5945_s10 + $0x28] sm:$0xff]  }
  0xea   : > { %4674 = vmatprep.subr.bf16.mxu1 %v5429_v50  ;;  %v1097_v9 = vrot.slane %v6563_v2, 1 }
  0xed   : > { %4675 = vmatpush3.bf16.msra.mxu1 %v5429_v50  ;;  %v3239_v50 = vld [vmem:[%s6521_s29 + $0x28] sm:$0xff] }
  0xee   : > { %4708 = vmatprep.subr.bf16.mxu1 %v6476_v55  ;;  %3293 = vperm.xlu1 %5359, %v3239_v50   ;;  %v3247_v50 = vld [vmem:[%s6521_s29 + $0x68] sm:$0xff] }
  0xef   : > { %4645 = vmatmul.mubr.bf16.gmra.mrb[16].mxu1 %v6129_v34 }
  0xf0   : > { %4869 = vmatmul.mubr.bf16.vlgmr.msra.gmra.mrb[0].mxu0 %v6243_v3  ;;  %4648 = vmatprep.mubr.bf16.mxu1 %v6163_v0  ;;  %v5434_v3 = vld [vmem:[%s7119_s2 + $0x1e8] sm:$0xff]  }
  0xf1   : > { %4901 = vmatpush3.bf16.msra.mxu0 %v6386_v12  ;;  %4872 = vmatprep.mubr.bf16.mxu0 %v6280_v39  ;;  %v5436_v12 = vld [vmem:[%s7119_s2 + $0x1f0] sm:$0xff]  }
  0xf2   : > { %4902 = vmatprep.subr.bf16.mxu0 %v5426_v38 }
  0xf5   : > { %4903 = vmatpush3.bf16.msra.mxu0 %v5426_v38  ;;  %v6575_v38 = vsel %vm1087_vm4, %v1095_v56, %v1097_v9 }
  0xf6   : > { %4904 = vmatprep.subr.bf16.mxu0 %v5428_v61 }
  0xf7   : > { %4649 = vmatmul.mubr.bf16.gmra.mrb[20].mxu1 %v6175_v10 }
  0xf8   : > { %4873 = vmatmul.mubr.bf16.gmra.mrb[4].mxu0 %v6285_v43  ;;  %4652 = vmatprep.mubr.bf16.mxu1 %v6203_v36  ;;  %v5454_v43 = vld [vmem:[%s5945_s10 + $0x8] sm:$0xff]  }
  0xf9   : > { %4876 = vmatprep.mubr.bf16.mxu0 %v6310_v6  ;;  %4905 = vmatpush3.bf16.msra.mxu0 %v5428_v61  ;;  %v5453_v6 = vld [vmem:[%s5945_s10] sm:$0xff]   ;;  %v1089_v30 = vrot.slane %v5454_v43, 1  ;;  %v5438_v61 = vld [vmem:[%s7119_s2 + $0xd8] sm:$0xff]  }
  0xfa   : > { %4906 = vmatprep.subr.bf16.mxu0 %v5430_v18  ;;  %v1088_v39 = vrot.slane %v5453_v6, 1  ;;  %v3242_v6 = vld [vmem:[%s6521_s29 + $0x40] sm:$0xff] }
  0xfd   : > { %4907 = vmatpush3.bf16.msra.mxu0 %v5430_v18  ;;  %v6584_v18 = vld [vmem:[%s5945_s10 + $0x30] sm:$0xff]  }
  0xfe   : > { %4908 = vmatprep.subr.bf16.mxu0 %v5432_v59 }
  0xff   : > { %4653 = vmatmul.mubr.bf16.gmra.mrb[24].mxu1 %v6214_v44 }
 0x100   : > { %4877 = vmatmul.mubr.bf16.gmra.mrb[8].mxu0 %v6318_v63  ;;  %4656 = vmatprep.mubr.bf16.mxu1 %v6250_v7  ;;  %v1090_v63 = vsel %vm1087_vm4, %v1088_v39, %v1089_v30  ;;  %v6591_v39 = vld [vmem:[%s5945_s10 + $0x38] sm:$0xff]  }
 0x101   : > { %4880 = vmatprep.mubr.bf16.mxu0 %v6357_v35  ;;  %4909 = vmatpush3.bf16.msra.mxu0 %v5432_v59  ;;  %v5440_v35 = vld [vmem:[%s7119_s2 + $0x1f8] sm:$0xff]   ;;  %v1099_v59 = vrot.slane %v6584_v18, 1  ;;  %v1101_v43 = vrot.slane %v6591_v39, 1 }
 0x102   : > { %4910 = vmatprep.subr.bf16.mxu0 %v5434_v3 }
 0x105   : > { %4911 = vmatpush3.bf16.msra.mxu0 %v5434_v3  ;;  %v3241_v3 = vld [vmem:[%s6521_s29 + $0x38] sm:$0xff] }
 0x106   : > { %4912 = vmatprep.subr.bf16.mxu0 %v5436_v12  ;;  %3303 = vperm.xlu1 %5359, %v3241_v3   ;;  %v3249_v3 = vld [vmem:[%s6521_s29 + $0x78] sm:$0xff] }
 0x107   : > { %4657 = vmatmul.mubr.bf16.gmra.mrb[28].mxu1 %v6256_v11 }
 0x108   : > { %4881 = vmatmul.mubr.bf16.gmra.mrb[12].mxu0 %v6362_v51  ;;  %4676 = vmatprep.mubr.bf16.mxu1 %v1090_v63  ;;  %v6538_v51 = vld [vmem:[%s7119_s2 + $0x200] sm:$0xff]   ;;  %v3244_v63 = vld [vmem:[%s6521_s29 + $0x50] sm:$0xff] }
 0x109   : > { %4884 = vmatprep.mubr.bf16.mxu0 %v6398_v49  ;;  %4913 = vmatpush3.bf16.msra.mxu0 %v5436_v12  ;;  %v6541_v49 = vsel %vm1087_vm4, %v1089_v30, %v1091_v26  ;;  %v3243_v30 = vld [vmem:[%s6521_s29 + $0x48] sm:$0xff]  ;;  %v6599_v12 = vsel %vm1087_vm4, %v1097_v9, %v1099_v59  ;;  %v5445_v9 = vld [vmem:[%s7119_s2 + $0xf0] sm:$0xff]  }
 0x10a   : > { %4914 = vmatprep.subr.bf16.mxu0 %v5440_v35  ;;  %v5443_v26 = vld [vmem:[%s7119_s2 + $0xe8] sm:$0xff]   ;;  %3313 = vperm.xlu1 %5359, %v3243_v30  }
 0x10d   : > { %4915 = vmatpush3.bf16.msra.mxu0 %v5440_v35  ;;  %v6606_v35 = vld [vmem:[%s5952_s16 + $0x10] ss:$0 sps:$4 sm:$0xff]  }
 0x10e   : > { %4948 = vmatprep.subr.bf16.mxu0 %v6538_v51  ;;  %3323 = vperm.xlu1 %5359, %v3245_v22   ;;  %v3254_v22 = vld [vmem:[%s6521_s29 + $0xa0] sm:$0xff] }
 0x10f   : > { %4677 = vmatmul.mubr.bf16.vlgmr.msra.gmra.mrb[0].mxu1 %v6541_v49 }
 0x110   : > { %4885 = vmatmul.mubr.bf16.gmra.mrb[16].mxu0 %v6403_v14  ;;  %4709 = vmatpush3.bf16.msra.mxu1 %v6476_v55  ;;  %v5435_v14 = vld [vmem:[%s7119_s2 + $0xd0] sm:$0xff]   ;;  %v6571_v55 = vsel %vm1087_vm4, %v1093_v24, %v1095_v56  ;;  %v6617_v24 = vld [vmem:[%s5945_s10 + $0x40] sm:$0xff]   ;;  %v1726_v56 = vrot.slane %v1724_v33, 1 }
 0x111   : > { %4680 = vmatprep.mubr.bf16.mxu1 %v6545_v13  ;;  %4888 = vmatprep.mubr.bf16.mxu0 %v6427_v48  ;;  %v3240_v48 = vld [vmem:[%s6521_s29 + $0x30] sm:$0xff]  ;;  %v1103_v40 = vrot.slane %v6617_v24, 1 }
 0x112   : > { %4710 = vmatprep.subr.bf16.mxu1 %v5433_v15  ;;  %3298 = vperm.xlu0 %5358, %v3240_v48  }
 0x113   : > { %v6636_v48 = vsel %vm1087_vm4, %v1101_v43, %v1103_v40  ;;  %3333 = vperm.xlu1 %5359, %v3247_v50   ;;  %v5449_v50 = vld [vmem:[%s7119_s2 + $0x220] sm:$0xff]  }
 0x114   : > { %4711 = vmatpush3.bf16.msra.mxu1 %v5433_v15  ;;  %v3246_v15 = vld [vmem:[%s6521_s29 + $0x60] sm:$0xff] }
 0x115   : > { %4712 = vmatprep.subr.bf16.mxu1 %v5435_v14 }
 0x116   : > { %3308 = vperm.xlu0 %5358, %v3242_v6   ;;  %v3250_v6 = vld [vmem:[%s6521_s29 + $0x80] sm:$0xff] }
 0x117   : > { %4681 = vmatmul.mubr.bf16.gmra.mrb[4].mxu1 %v6571_v55  ;;  %3343 = vperm.xlu1 %5359, %v3249_v3   ;;  %v5450_v3 = vld [vmem:[%s7119_s2 + $0x228] sm:$0xff]  }
 0x118   : > { %4889 = vmatmul.mubr.bf16.gmra.mrb[20].mxu0 %v6430_v53  ;;  %4684 = vmatprep.mubr.bf16.mxu1 %v6575_v38  ;;  %v5441_v53 = vld [vmem:[%s7119_s2 + $0xe0] sm:$0xff]  }
 0x119   : > { %4892 = vmatprep.mubr.bf16.mxu0 %v6444_v57  ;;  %4713 = vmatpush3.bf16.msra.mxu1 %v5435_v14  ;;  %v6603_v57 = vsel %vm1087_vm4, %v1099_v59, %v1101_v43  ;;  %v6632_v14 = vor.u32 %v1729_v21, %v1726_v56  ;;  %v5447_v59 = vld [vmem:[%s7119_s2 + $0xf8] sm:$0xff]   ;;  %v1109_v43 = vrot.slane %v6175_v10, 1  ;;  %v6669_v10 = vld [vmem:[%s7119_s2 + $0x100] sm:$0xff]   ;;  %v5446_v56 = vld [vmem:[%s7119_s2 + $0x210] sm:$0xff]  }
 0x11a   : > { %4714 = vmatprep.subr.bf16.mxu1 %v5438_v61  ;;  %3318 = vperm.xlu0 %5358, %v3244_v63   ;;  %v3252_v63 = vld [vmem:[%s6521_s29 + $0x90] sm:$0xff] }
 0x11d   : > { %4715 = vmatpush3.bf16.msra.mxu1 %v5438_v61  ;;  %v6643_v61 = vsel %vm1087_vm4, %v1103_v40, %v1105_v32  ;;  %v1111_v40 = vrot.slane %v6203_v36, 1  ;;  %v3256_v36 = vld [vmem:[%s6521_s29 + $0xb0] sm:$0xff] }
 0x11e   : > { %4716 = vmatprep.subr.bf16.mxu1 %v5441_v53  ;;  %3328 = vperm.xlu0 %5358, %v3246_v15   ;;  %v1113_v15 = vrot.slane %v6214_v44, 1  ;;  %v5448_v44 = vld [vmem:[%s7119_s2 + $0x218] sm:$0xff]  }
 0x11f   : > { %4685 = vmatmul.mubr.bf16.gmra.mrb[8].mxu1 %v6599_v12  ;;  %v6686_v21 = vsel %vm1087_vm4, %v1109_v43, %v1111_v40 }
 0x120   : > { %4893 = vmatmul.mubr.bf16.gmra.mrb[24].mxu0 %v6452_v42  ;;  %4688 = vmatprep.mubr.bf16.mxu1 %v6603_v57  ;;  %v2329_v42 = vrot.slane %v6606_v35, 2 }
 0x121   : > { %4896 = vmatprep.mubr.bf16.mxu0 %v6350_v20  ;;  %4717 = vmatpush3.bf16.msra.mxu1 %v5441_v53  ;;  %v3248_v20 = vld [vmem:[%s6521_s29 + $0x70] sm:$0xff]  ;;  %v3251_v53 = vld [vmem:[%s6521_s29 + $0x88] sm:$0xff] }
 0x122   : > { %4718 = vmatprep.subr.bf16.mxu1 %v5443_v26  ;;  %v2330_v34 = vsel %vm2015_vm2, %v2327_v8, %v2329_v42  ;;  %3338 = vperm.xlu0 %5358, %v3248_v20   ;;  %v1107_v8 = vrot.slane %v6163_v0, 1  ;;  %v5444_v0 = vld [vmem:[%s7119_s2 + $0x208] sm:$0xff]   ;;  %v1115_v42 = vrot.slane %v6250_v7, 1  ;;  %v3260_v7 = vld [vmem:[%s6521_s29 + $0xd0] sm:$0xff] }
 0x123   : > { %3353 = vperm.xlu1 %5359, %v3251_v53   ;;  %v3262_v53 = vld [vmem:[%s6521_s29 + $0xe0] sm:$0xff] }
 0x124   : > { %v6657_v30 = vsel %vm1087_vm4, %v1105_v32, %v1107_v8  ;;  %v3258_v32 = vld [vmem:[%s6521_s29 + $0xc0] sm:$0xff]  ;;  %v6710_v20 = vsel %vm1087_vm4, %v1113_v15, %v1115_v42 }
 0x125   : > { %4719 = vmatpush3.bf16.msra.mxu1 %v5443_v26  ;;  %v6661_v26 = vsel %vm1087_vm4, %v1107_v8, %v1109_v43  ;;  %v2628_v8 = vrot.slane %v6196_v31, 3  ;;  %v1119_v43 = vrot.slane %v6293_v60, 1 }
 0x126   : > { %4720 = vmatprep.subr.bf16.mxu1 %v5445_v9  ;;  %3348 = vperm.xlu0 %5358, %v3250_v6   ;;  %v3261_v6 = vld [vmem:[%s6521_s29 + $0xd8] sm:$0xff] }
 0x127   : > { %4689 = vmatmul.mubr.bf16.gmra.mrb[12].mxu1 %v6636_v48 }
 0x128   : > { %4897 = vmatmul.mubr.bf16.gmra.mrb[28].mxu0 %v2330_v34  ;;  %4692 = vmatprep.mubr.bf16.mxu1 %v6643_v61  ;;  %v2624_v34 = vrot.slane %v6183_v19, 3 }
 0x129   : > { %4916 = vmatprep.mubr.bf16.mxu0 %v6353_v25  ;;  %4721 = vmatpush3.bf16.msra.mxu1 %v5445_v9  ;;  %v3253_v25 = vld [vmem:[%s6521_s29 + $0x98] sm:$0xff]  ;;  %v6703_v9 = vrot.slane %v6256_v11, 1  ;;  %v2623_v11 = vrot.slane %v6193_v29, 2 }
 0x12a   : > { %4722 = vmatprep.subr.bf16.mxu1 %v5447_v59  ;;  %3358 = vperm.xlu0 %5358, %v3252_v63  }
 0x12b   : > { %3363 = vperm.xlu1 %5359, %v3253_v25   ;;  %v2625_v63 = vor.u32 %v2624_v34, %v2623_v11  ;;  %v5451_v25 = vld [vmem:[%s7119_s2 + $0x230] sm:$0xff]   ;;  %v7178_v34 = vld [vmem:[#allocation20_spill] sm:$0xff] }
 0x12d   : > { %4723 = vmatpush3.bf16.msra.mxu1 %v5447_v59  ;;  %v2627_v59 = vrot.slane %v6230_v58, 2  ;;  %v2626_v60 = vsel %vm2591_vm3, %v6400_v4, %v2625_v63  ;;  %v3265_v4 = vld [vmem:[%s6521_s29 + $0xf8] sm:$0xff] }
 0x12e   : > { %4996 = vmatprep.subr.bf16.mxu1 %v6669_v10  ;;  %3368 = vperm.xlu0 %5358, %v3254_v22   ;;  %v3264_v22 = vld [vmem:[%s6521_s29 + $0xf0] sm:$0xff] }
 0x12f   : > { %4693 = vmatmul.mubr.bf16.gmra.mrb[16].mxu1 %v6657_v30 }
 0x130   : > { %4917 = vmatmul.mubr.bf16.vlgmr.msra.gmra.mrb[0].mxu0 %v6373_v54  ;;  %4696 = vmatprep.mubr.bf16.mxu1 %v6661_v26  ;;  %v3255_v54 = vld [vmem:[%s6521_s29 + $0xa8] sm:$0xff] }
 0x131   : > { %4949 = vmatpush3.bf16.msra.mxu0 %v6538_v51  ;;  %4920 = vmatprep.mubr.bf16.mxu0 %v6379_v1  ;;  %v6690_v51 = vsel %vm1087_vm4, %v1111_v40, %v1113_v15  ;;  %v3257_v1 = vld [vmem:[%s6521_s29 + $0xb8] sm:$0xff]  ;;  %v3263_v40 = vld [vmem:[%s6521_s29 + $0xe8] sm:$0xff]  ;;  %v2632_v15 = vrot.slane %v6221_v52, 3 }
 0x132   : > { %4950 = vmatprep.subr.bf16.mxu0 %v5444_v0  ;;  %3373 = vperm.xlu1 %5359, %v3255_v54   ;;  %v7175_v54 = vld [vmem:[#allocation19_spill] sm:$0xff] }
 0x133   : > { %3378 = vperm.xlu0 %5358, %v3256_v36   ;;  %v2635_v36 = vrot.slane %v7175_v54, 2 }
 0x135   : > { %4951 = vmatpush3.bf16.msra.mxu0 %v5444_v0  ;;  %v2629_v0 = vor.u32 %v2628_v8, %v2627_v59  ;;  %v2640_v59 = vrot.slane %v7178_v34, 3 }
 0x136   : > { %4952 = vmatprep.subr.bf16.mxu0 %v5446_v56  ;;  %3383 = vperm.xlu1 %5359, %v3257_v1  }
 0x137   : > { %4697 = vmatmul.mubr.bf16.gmra.mrb[20].mxu1 %v6686_v21  ;;  %3388 = vperm.xlu0 %5358, %v3258_v32  }
 0x138   : > { %4921 = vmatmul.mubr.bf16.gmra.mrb[4].mxu0 %v6389_v17  ;;  %4700 = vmatprep.mubr.bf16.mxu1 %v6690_v51  ;;  %v3259_v17 = vld [vmem:[%s6521_s29 + $0xc8] sm:$0xff] }
 0x139   : > { %4924 = vmatprep.mubr.bf16.mxu0 %v6395_v28  ;;  %4953 = vmatpush3.bf16.msra.mxu0 %v5446_v56  ;;  %v6715_v28 = vsel %vm1087_vm4, %v1115_v42, %v6703_v9  ;;  %v2630_v56 = vsel %vm2591_vm3, %v2625_v63, %v2629_v0  ;;  %v5452_v42 = vld [vmem:[%s7119_s2 + $0x238] sm:$0xff]   ;;  %v5463_v63 = vld [vmem:[%s7119_s2 + $0x108] sm:$0xff]  }
 0x13a   : > { %4954 = vmatprep.subr.bf16.mxu0 %v5448_v44  ;;  %3393 = vperm.xlu1 %5359, %v3259_v17  }
 0x13b   : > { %3398 = vperm.xlu0 %5358, %v3260_v7   ;;  %v7177_v7 = vld [vmem:[#allocation21_spill] sm:$0xff] }
 0x13c   : > { %v2639_v11 = vrot.slane %v7177_v7, 2 }
 0x13d   : > { %4955 = vmatpush3.bf16.msra.mxu0 %v5448_v44  ;;  %v7176_v44 = vld [vmem:[#allocation18_spill] sm:$0xff] }
 0x13e   : > { %4956 = vmatprep.subr.bf16.mxu0 %v5449_v50  ;;  %3403 = vperm.xlu1 %5359, %v3261_v6   ;;  %v2636_v1 = vrot.slane %v7176_v44, 3 }
 0x13f   : > { %4701 = vmatmul.mubr.bf16.gmra.mrb[24].mxu1 %v6710_v20  ;;  %3408 = vperm.xlu0 %5358, %v3262_v53  }
 0x140   : > { %4925 = vmatmul.mubr.bf16.gmra.mrb[8].mxu0 %v6410_v45  ;;  %4704 = vmatprep.mubr.bf16.mxu1 %v6715_v28  ;;  %v1120_v45 = vsel %vm1087_vm4, %v6703_v9, %v1119_v43  ;;  %v7180_v43 = vld [vmem:[#allocation22_spill] sm:$0xff] }
 0x141   : > { %4928 = vmatprep.mubr.bf16.mxu0 %v6415_v46  ;;  %4957 = vmatpush3.bf16.msra.mxu0 %v5449_v50  ;;  %v2631_v46 = vrot.slane %v6237_v62, 2  ;;  %v2637_v50 = vor.u32 %v2636_v1, %v2635_v36  ;;  %v2644_v53 = vrot.slane %v7180_v43, 3  ;;  %v2664_v36 = vshll.u32 %v6606_v35, 16 }
 0x142   : > { %4958 = vmatprep.subr.bf16.mxu0 %v5450_v3  ;;  %3413 = vperm.xlu1 %5359, %v3263_v40   ;;  %v2655_v40 = vshll.u32 %v6331_v41, 16 }
 0x143   : > { %3418 = vperm.xlu0 %5358, %v3264_v22   ;;  %v2633_v32 = vor.u32 %v2632_v15, %v2631_v46 }
 0x144   : > { %v2657_v46 = vrot.slane %v2655_v40, 3 }
 0x145   : > { %4959 = vmatpush3.bf16.msra.mxu0 %v5450_v3  ;;  %v2634_v17 = vsel %vm2591_vm3, %v2629_v0, %v2633_v32  ;;  %v2638_v8 = vsel %vm2591_vm3, %v2633_v32, %v2637_v50  ;;  %v7179_v3 = vld [vmem:[#allocation23_spill] sm:$0xff] }
 0x146   : > { %4960 = vmatprep.subr.bf16.mxu0 %v5451_v25  ;;  %3423 = vperm.xlu1 %5359, %v3265_v4   ;;  %v2643_v6 = vrot.slane %v7179_v3, 2  ;;  %v5466_v4 = vld [vmem:[%s7119_s2 + $0x120] sm:$0xff]  }
 0x147   : > { %4705 = vmatmul.mubr.bf16.gmra.mrb[28].mxu1 %v1120_v45  ;;  %v2648_v45 = vrot.slane %v1727_v47, 3  ;;  %v5465_v47 = vld [vmem:[%s7119_s2 + $0x118] sm:$0xff]  }
 0x148   : > { %4929 = vmatmul.mubr.bf16.gmra.mrb[12].mxu0 %v2626_v60  ;;  %4724 = vmatprep.mubr.bf16.mxu1 %v6541_v49  ;;  %v2641_v49 = vor.u32 %v2640_v59, %v2639_v11  ;;  %v2645_v0 = vor.u32 %v2644_v53, %v2643_v6  ;;  %v5467_v11 = vld [vmem:[%s7119_s2 + $0x128] sm:$0xff]  }
 0x149   : > { %4932 = vmatprep.mubr.bf16.mxu0 %v2630_v56  ;;  %4961 = vmatpush3.bf16.msra.mxu0 %v5451_v25  ;;  %v2652_v25 = vshrl.u32 %v6331_v41, 16  ;;  %v2661_v56 = vshrl.u32 %v6606_v35, 16 }
 0x14a   : > { %4962 = vmatprep.subr.bf16.mxu0 %v5452_v42  ;;  %v2646_v22 = vsel %vm2591_vm3, %v2641_v49, %v2645_v0 }
 0x14b   : > { %v2654_v60 = vrot.slane %v2652_v25, 2  ;;  %v5471_v25 = vld [vmem:[%s5945_s10 + $0x50] sm:$0xff]  }
 0x14c   : > { %v2959_v40 = vrot.slane %v5471_v25, 3 }
 0x14d   : > { %4963 = vmatpush3.bf16.msra.mxu0 %v5452_v42  ;;  %v2663_v42 = vrot.slane %v2661_v56, 2 }
 0x14f   : > { %4725 = vmatmul.mubr.bf16.vlgmr.msra.gmra.mrb[0].mxu1 %v6545_v13  ;;  %v2642_v13 = vsel %vm2591_vm3, %v2637_v50, %v2641_v49  ;;  %v2944_v50 = vrot.slane %v6525_v37, 3  ;;  %v2947_v37 = vrot.slane %v6555_v16, 3  ;;  %v2951_v16 = vrot.slane %v6584_v18, 3  ;;  %v5470_v49 = vld [vmem:[%s5945_s10 + $0x48] sm:$0xff]  }
 0x150   : > { %4933 = vmatmul.mubr.bf16.gmra.mrb[16].mxu0 %v2634_v17  ;;  %5004 = vmatpush3.bf16.msra.mxu1 %v6669_v10  ;;  %v5464_v10 = vld [vmem:[%s7119_s2 + $0x110] sm:$0xff]   ;;  %v2945_v17 = vrot.slane %v6532_v5, 3  ;;  %v2949_v5 = vrot.slane %v6563_v2, 3  ;;  %v2953_v2 = vrot.slane %v6591_v39, 3  ;;  %v2957_v18 = vrot.slane %v5470_v49, 3 }
 0x151   : > { %4728 = vmatprep.mubr.bf16.mxu1 %v6571_v55  ;;  %4936 = vmatprep.mubr.bf16.mxu0 %v2638_v8  ;;  %v2647_v55 = vrot.slane %v1724_v33, 2  ;;  %v2658_v33 = vor.u32 %v2657_v46, %v2654_v60  ;;  %v5469_v8 = vld [vmem:[%s7119_s2 + $0x138] sm:$0xff]   ;;  %v1707_v60 = vrot.slane %v6237_v62, 1  ;;  %v1708_v46 = vrot.slane %v6221_v52, 2 }
 0x152   : > { %4997 = vmatprep.subr.bf16.mxu1 %v5463_v63  ;;  %v2948_v6 = vsel %vm2943_vm5, %v2945_v17, %v2947_v37  ;;  %v2954_v53 = vsel %vm2943_vm5, %v2951_v16, %v2953_v2  ;;  %v1711_v62 = vrot.slane %v7175_v54, 1  ;;  %v1712_v52 = vrot.slane %v7176_v44, 2 }
 0x153   : > { %v2649_v15 = vor.u32 %v2648_v45, %v2647_v55  ;;  %v7181_v45 = vld [vmem:[#allocation17_spill] sm:$0xff] }
 0x154   : > { %5005 = vmatpush3.bf16.msra.mxu1 %v5463_v63 }
 0x155   : > { %4998 = vmatprep.subr.bf16.mxu1 %v5464_v10  ;;  %v2650_v1 = vsel %vm2591_vm3, %v2645_v0, %v2649_v15  ;;  %v1699_v0 = vrot.slane %v6193_v29, 1  ;;  %v1704_v29 = vrot.slane %v6196_v31, 2  ;;  %v5474_v31 = vld [vmem:[%s5945_s10 + $0x68] sm:$0xff]  }
 0x157   : > { %4729 = vmatmul.mubr.bf16.gmra.mrb[4].mxu1 %v6575_v38  ;;  %v2666_v38 = vrot.slane %v2664_v36, 3  ;;  %v5473_v36 = vld [vmem:[%s5945_s10 + $0x60] sm:$0xff]  }
 0x158   : > { %4937 = vmatmul.mubr.bf16.gmra.mrb[20].mxu0 %v2642_v13  ;;  %4732 = vmatprep.mubr.bf16.mxu1 %v6599_v12  ;;  %v2659_v12 = vsel %vm2591_vm3, %v2649_v15, %v2658_v33 }
 0x159   : > { %4940 = vmatprep.mubr.bf16.mxu0 %v2646_v22  ;;  %5006 = vmatpush3.bf16.msra.mxu1 %v5464_v10  ;;  %v2667_v32 = vor.u32 %v2666_v38, %v2663_v42  ;;  %v5472_v10 = vld [vmem:[%s5945_s10 + $0x58] sm:$0xff]  }
 0x15a   : > { %4999 = vmatprep.subr.bf16.mxu1 %v5465_v47  ;;  %v2961_v55 = vrot.slane %v5472_v10, 3 }
 0x15b   : > { %v2668_v59 = vsel %vm2591_vm3, %v2658_v33, %v2667_v32  ;;  %v1709_v33 = vor.u32 %v1708_v46, %v1707_v60 }
 0x15c   : > { %v2962_v15 = vsel %vm2943_vm5, %v2959_v40, %v2961_v55 }
 0x15d   : > { %5007 = vmatpush3.bf16.msra.mxu1 %v5465_v47  ;;  %v2965_v47 = vrot.slane %v5474_v31, 3 }
 0x15e   : > { %5000 = vmatprep.subr.bf16.mxu1 %v5466_v4 }
 0x15f   : > { %4733 = vmatmul.mubr.bf16.gmra.mrb[8].mxu1 %v6603_v57  ;;  %v2946_v57 = vsel %vm2943_vm5, %v2944_v50, %v2945_v17  ;;  %v1713_v50 = vor.u32 %v1712_v52, %v1711_v62  ;;  %v5475_v17 = vld [vmem:[%s5945_s10 + $0x70] sm:$0xff]  }
 0x160   : > { %4941 = vmatmul.mubr.bf16.gmra.mrb[24].mxu0 %v2650_v1  ;;  %4736 = vmatprep.mubr.bf16.mxu1 %v6636_v48  ;;  %v5468_v48 = vld [vmem:[%s7119_s2 + $0x130] sm:$0xff]  }
 0x161   : > { %4944 = vmatprep.mubr.bf16.mxu0 %v2659_v12  ;;  %5008 = vmatpush3.bf16.msra.mxu1 %v5466_v4  ;;  %v1715_v12 = vrot.slane %v7177_v7, 1  ;;  %v1716_v4 = vrot.slane %v7178_v34, 2  ;;  %v1720_v7 = vrot.slane %v7180_v43, 2 }
 0x162   : > { %5001 = vmatprep.subr.bf16.mxu1 %v5467_v11 }
 0x163   : > { %v1717_v54 = vor.u32 %v1716_v4, %v1715_v12 }
 0x165   : > { %5009 = vmatpush3.bf16.msra.mxu1 %v5467_v11  ;;  %v2967_v11 = vrot.slane %v5475_v17, 3 }
 0x166   : > { %5002 = vmatprep.subr.bf16.mxu1 %v5468_v48 }
 0x167   : > { %4737 = vmatmul.mubr.bf16.gmra.mrb[12].mxu1 %v6643_v61  ;;  %v2950_v61 = vsel %vm2943_vm5, %v2947_v37, %v2949_v5  ;;  %v2968_v34 = vsel %vm2943_vm5, %v2965_v47, %v2967_v11  ;;  %v1718_v37 = vsel %vm1663_vm1, %v1713_v50, %v1717_v54 }
 0x168   : > { %4945 = vmatmul.mubr.bf16.gmra.mrb[28].mxu0 %v2668_v59  ;;  %4740 = vmatprep.mubr.bf16.mxu1 %v6657_v30  ;;  %v2952_v30 = vsel %vm2943_vm5, %v2949_v5, %v2951_v16  ;;  %v5476_v59 = vld [vmem:[%s5945_s10 + $0x78] sm:$0xff]   ;;  %v2971_v16 = vrot.slane %v6320_v27, 3  ;;  %s6903_s10 = scalar_lea.vmem [#allocation7], %s3947_s0  ;;  %s3950_s0 = sshll.u32 %s5939_s14, 3 }
 0x169   : > { %4964 = vmatprep.mubr.bf16.mxu0 %v2946_v57  ;;  %5010 = vmatpush3.bf16.msra.mxu1 %v5468_v48  ;;  %v2969_v44 = vrot.slane %v5476_v59, 3  ;;  %v1714_v57 = vsel %vm1663_vm1, %v1709_v33, %v1713_v50  ;;  %v1719_v48 = vrot.slane %v7179_v3, 1  ;;  %v2973_v3 = vrot.slane %v6331_v41, 3  ;;  %s3738_s16 = sshll.u32 %s6903_s10, 4  ;;  %s6986_s8 = scalar_lea.vmem [#allocation8], %s3950_s0  ;;  %s6977_s16 = int_to_ptr.vmem [resolvable:$true] %s3738_s16 }
 0x16a   : > { %5003 = vmatprep.subr.bf16.mxu1 %v5469_v8  ;;  %s5538_s29 = scalar_lea.vmem %s6977_s16, 2048  ;;  %p5545_p1 = scmp.lt.s32.totalorder %s6977_s16, %s5543_s21 }
 0x16b   : > { %v2970_v5 = vsel %vm2943_vm5, %v2967_v11, %v2969_v44  ;;  %p5539_p7 = scmp.ne.s32.totalorder %s6977_s16, %s5538_s29 }
 0x16d   : > { %5011 = vmatpush3.bf16.msra.mxu1 %v5469_v8  ;;  %v1721_v8 = vor.u32 %v1720_v7, %v1719_v48  ;;  %p5540_p11 = pnand %p5539_p7, %p7182_p2 }
 0x16f   : > { %4741 = vmatmul.mubr.bf16.gmra.mrb[16].mxu1 %v6661_v26  ;;  %v2955_v26 = vrot.slane %v6617_v24, 3  ;;  %v1401_v24 = vrot.slane %v6448_v23, 1  ;;  %v1722_v43 = vsel %vm1663_vm1, %v1717_v54, %v1721_v8  ;;  %p5541_p13 = pneg %p5540_p11 }
 0x170   : > { %4965 = vmatmul.mubr.bf16.vlgmr.msra.gmra.mrb[0].mxu0 %v2948_v6  ;;  %4744 = vmatprep.mubr.bf16.mxu1 %v6686_v21  ;;  %v1399_v21 = vrot.slane %v6320_v27, 1  ;;  %v1733_v6 = vshrl.u32 %v6448_v23, 16  ;;  %v2975_v27 = vrot.slane %v6606_v35, 3 }
 0x171   : > { %4968 = vmatprep.mubr.bf16.mxu0 %v2950_v61  ;;  %v2956_v39 = vsel %vm2943_vm5, %v2953_v2, %v2955_v26  ;;  %v1736_v61 = vshll.u32 %v6448_v23, 16 }
 0x172   : > { %v1400_v63 = vsel %vm1087_vm4, %v6703_v9, %v1399_v21  ;;  %v1402_v9 = vsel %vm1087_vm4, %v1399_v21, %v1401_v24  ;;  %v1735_v2 = vrot.slane %v1733_v6, 1  ;;  %v2974_v21 = vsel %vm2943_vm5, %v2971_v16, %v2973_v3 }
 0x173   : > { %v2976_v49 = vsel %vm2943_vm5, %v2973_v3, %v2975_v27 }
 0x177   : > { %4745 = vmatmul.mubr.bf16.gmra.mrb[20].mxu1 %v6690_v51  ;;  %v1700_v51 = vrot.slane %v6183_v19, 2  ;;  %v1703_v19 = vrot.slane %v6230_v58, 1  ;;  %v2963_v58 = vrot.slane %v5473_v36, 3 }
 0x178   : > { %4969 = vmatmul.mubr.bf16.gmra.mrb[4].mxu0 %v2952_v30  ;;  %4748 = vmatprep.mubr.bf16.mxu1 %v6710_v20  ;;  %v2958_v20 = vsel %vm2943_vm5, %v2955_v26, %v2957_v18  ;;  %v1738_v30 = vrot.slane %v1736_v61, 2  ;;  %v1731_v26 = vsel %vm1663_vm1, %v1721_v8, %v6632_v14 }
 0x179   : > { %4972 = vmatprep.mubr.bf16.mxu0 %v2954_v53  ;;  %v1701_v13 = vor.u32 %v1700_v51, %v1699_v0  ;;  %v1705_v56 = vor.u32 %v1704_v29, %v1703_v19  ;;  %v2964_v42 = vsel %vm2943_vm5, %v2961_v55, %v2963_v58  ;;  %v2966_v32 = vsel %vm2943_vm5, %v2963_v58, %v2965_v47 }
 0x17a   : > { %v2972_v53 = vsel %vm2943_vm5, %v2969_v44, %v2971_v16  ;;  %v1739_v23 = vor.u32 %v1738_v30, %v1735_v2 }
 0x17b   : > { %v1702_v22 = vsel %vm1663_vm1, %v7181_v45, %v1701_v13  ;;  %v1706_v1 = vsel %vm1663_vm1, %v1701_v13, %v1705_v56  ;;  %v1710_v38 = vsel %vm1663_vm1, %v1705_v56, %v1709_v33 }
 0x17c   : > { %v1740_v41 = vsel %vm1663_vm1, %v6632_v14, %v1739_v23 }
 0x17f   : > { %4749 = vmatmul.mubr.bf16.gmra.mrb[24].mxu1 %v6715_v28  ;;  %v2960_v28 = vsel %vm2943_vm5, %v2957_v18, %v2959_v40  ;;  %v3269_v18 = vpop.permute.xlu0 %3268 }
 0x180   : > { %4973 = vmatmul.mubr.bf16.gmra.mrb[8].mxu0 %v2956_v39  ;;  %4752 = vmatprep.mubr.bf16.mxu1 %v1400_v63  ;;  %v3279_v39 = vpop.permute.xlu1 %3278 }
 0x181   : > { %4976 = vmatprep.mubr.bf16.mxu0 %v2958_v20 }
 0x183   : > { %v3274_v20 = vpop.permute.xlu0 %3273 }
 0x184   : > { %v3284_v25 = vpop.permute.xlu1 %3283 }
 0x187   : > { %4753 = vmatmul.mubr.bf16.gmra.mrb[28].mxu1 %v1402_v9  ;;  %v3289_v13 = vpop.permute.xlu0 %3288 }
 0x188   : > { %4977 = vmatmul.mubr.bf16.gmra.mrb[12].mxu0 %v2960_v28  ;;  %4788 = vmatprep.mubr.bf16.mxu1 %v1702_v22  ;;  %v6867_v55 = vpop.permute.xlu1 %3293 }
 0x189   : > { %4980 = vmatprep.mubr.bf16.mxu0 %v2962_v15 }
 0x18c   : > { %v3304_v19 = vpop.permute.xlu1 %3303 }
 0x18f   : > { %4789 = vmatmul.mubr.bf16.vlgmr.msra.gmra.mrb[16].mxu1 %v1706_v1 }
 0x190   : > { %4981 = vmatmul.mubr.bf16.gmra.mrb[16].mxu0 %v2964_v42  ;;  %4792 = vmatprep.mubr.bf16.mxu1 %v1710_v38  ;;  %v6879_v46 = vpop.permute.xlu1 %3313 }
 0x191   : > { %4984 = vmatprep.mubr.bf16.mxu0 %v2966_v32  ;;  %v3299_v14 = vpop.permute.xlu0 %3298 }
 0x194   : > { %v6891_v31 = vpop.permute.xlu1 %3323 }
 0x195   : > { %v6877_v60 = vpop.permute.xlu0 %3308 }
 0x197   : > { %4793 = vmatmul.mubr.bf16.gmra.mrb[20].mxu1 %v1714_v57 }
 0x198   : > { %4985 = vmatmul.mubr.bf16.gmra.mrb[20].mxu0 %v2968_v34  ;;  %4796 = vmatprep.mubr.bf16.mxu1 %v1718_v37  ;;  %v6895_v62 = vpop.permute.xlu1 %3333 }
 0x199   : > { %4988 = vmatprep.mubr.bf16.mxu0 %v2970_v5  ;;  %v6887_v58 = vpop.permute.xlu0 %3318 }
 0x19c   : > { %v6899_v48 = vpop.permute.xlu1 %3343 }
 0x19d   : > { %v6893_v47 = vpop.permute.xlu0 %3328 }
 0x19f   : > { %4797 = vmatmul.mubr.bf16.gmra.mrb[24].mxu1 %v1722_v43 }
 0x1a0   : > { %4989 = vmatmul.mubr.bf16.gmra.mrb[24].mxu0 %v2972_v53  ;;  %4800 = vmatprep.mubr.bf16.mxu1 %v1731_v26 }
 0x1a1   : > { %4992 = vmatprep.mubr.bf16.mxu0 %v2974_v21  ;;  %v6897_v54 = vpop.permute.xlu0 %3338 }
 0x1a5   : > { %v6907_v23 = vpop.permute.xlu0 %3348 }
 0x1a7   : > { %4801 = vmatmul.mubr.bf16.gmra.mrb[28].mxu1 %v1740_v41 }
 0x1a8   : > { %4993 = vmatmul.mubr.bf16.gmra.mrb[28].mxu0 %v2976_v49 }
 0x222   : > { %v4726_v63 = vpop.f32.mrb[0].mxu1 }
 0x223   : > { %v1487_v0 = vpop.f32.mrb[1].mxu1 }
 0x224   : > { %v4727_v51 = vpop.f32.mrb[2].mxu1 }
 0x225   : > { %v1490_v24 = vpop.f32.mrb[3].mxu1 }
 0x22a   : > { %v4730_v40 = vpop.f32.mrb[4].mxu1 }
 0x22b   : > { %v1503_v10 = vpop.f32.mrb[5].mxu1 }
 0x22c   : > { %v4731_v35 = vpop.f32.mrb[6].mxu1 }
 0x22d   : > { %v1506_v9 = vpop.f32.mrb[7].mxu1 }
 0x232   : > { %v6869_v29 = vpop.f32.mrb[8].mxu1 }
 0x233   : > { %v6871_v28 = vpop.f32.mrb[9].mxu1 }
 0x234   : > { %v6873_v45 = vpop.f32.mrb[10].mxu1 }
 0x235   : > { %v6875_v22 = vpop.f32.mrb[11].mxu1 }
 0x23a   : > { %v6881_v15 = vpop.f32.mrb[12].mxu1 }
 0x23b   : > { %v6883_v56 = vpop.f32.mrb[13].mxu1 }
 0x23c   : > { %v6885_v36 = vpop.f32.mrb[14].mxu1 }
 0x23d   : > { %v6889_v33 = vpop.f32.mrb[15].mxu1 }
 0x243   : > { %v4966_v1 = vpop.f32.mrb[0].mxu0 }
 0x244   : > { %v5012_v52 = vadd.f32 %v4966_v1, %v4726_v63  ;;  %v3075_v42 = vpop.f32.mrb[1].mxu0 }
 0x245   : > { %v5013_v38 = vadd.f32 %v3075_v42, %v1487_v0  ;;  %v4967_v12 = vpop.f32.mrb[2].mxu0 }
 0x246   : > { %v5014_v4 = vadd.f32 %v4967_v12, %v4727_v51  ;;  %v3078_v32 = vpop.f32.mrb[3].mxu0  ;;  %v3428_v59 = vmul.f32 %v5012_v52, %v3279_v39  ;;  %v6909_v39 = vpop.permute.xlu1 %3353 }
 0x247   : > { %v3426_v50 = vmul.f32 %v5013_v38, %v3269_v18  ;;  %v5015_v17 = vadd.f32 %v3078_v32, %v1490_v24 }
 0x248   : > { %v4261_v11 = vpack.c.bf16 %v5014_v4, %v5012_v52  ;;  %v3429_v7 = vmul.f32 %v5014_v4, %v3284_v25  ;;  %v3492_v16 = vmul.f32 %v5012_v52, %v3428_v59 }
 0x249   : > { %v3427_v44 = vmul.f32 %v5015_v17, %v3274_v20  ;;  %v4256_v57 = vpack.c.bf16 %v5015_v17, %v5013_v38  ;;  %v3490_v34 = vmul.f32 %v5013_v38, %v3426_v50  ;;  %v6915_v38 = vpop.permute.xlu0 %3358 }
 0x24a   : > { %4333 = vst [vmem:[%s6903_s10 + $0x8] sm:$0xff] %v4261_v11   ;;  %v3493_v53 = vmul.f32 %v5014_v4, %v3429_v7 }
 0x24b   : > { %v3458_v37 = vadd.f32 %v3427_v44, %v3426_v50  ;;  %v3491_v5 = vmul.f32 %v5015_v17, %v3427_v44  ;;  %4257 = vst [vmem:[%s6903_s10] sm:$0xff] %v4256_v57   ;;  %v4970_v8 = vpop.f32.mrb[4].mxu0 }
 0x24c   : > { %v5016_v6 = vadd.f32 %v4970_v8, %v4730_v40  ;;  %v3091_v61 = vpop.f32.mrb[5].mxu0 }
 0x24d   : > { %v3459_v3 = vadd.f32 %v3458_v37, %v3428_v59  ;;  %v3522_v43 = vadd.f32 %v3491_v5, %v3490_v34  ;;  %v5017_v2 = vadd.f32 %v3091_v61, %v1503_v10  ;;  %v4971_v30 = vpop.f32.mrb[6].mxu0  ;;  %v6927_v61 = vpop.permute.xlu0 %3368 }
 0x24e   : > { %v5018_v26 = vadd.f32 %v4971_v30, %v4731_v35  ;;  %v3094_v21 = vpop.f32.mrb[7].mxu0  ;;  %v3432_v63 = vmul.f32 %v5016_v6, %v3299_v14 }
 0x24f   : > { %v3523_v27 = vadd.f32 %v3522_v43, %v3492_v16  ;;  %v3430_v41 = vmul.f32 %v5017_v2, %v3289_v13  ;;  %v3460_v49 = vadd.f32 %v3459_v3, %v3429_v7  ;;  %v5019_v18 = vadd.f32 %v3094_v21, %v1506_v9 }
 0x250   : > { %v4271_v0 = vpack.c.bf16 %v5018_v26, %v5016_v6  ;;  %v3433_v40 = vmul.f32 %v5018_v26, %v3304_v19  ;;  %v3496_v14 = vmul.f32 %v5016_v6, %v3432_v63 }
 0x251   : > { %v3461_v51 = vadd.f32 %v3460_v49, %v3430_v41  ;;  %v3494_v20 = vmul.f32 %v5017_v2, %v3430_v41  ;;  %v3524_v24 = vadd.f32 %v3523_v27, %v3493_v53  ;;  %v3431_v25 = vmul.f32 %v5019_v18, %v6867_v55  ;;  %v6918_v55 = vpop.permute.xlu1 %3363 }
 0x252   : > { %4335 = vst [vmem:[%s6903_s10 + $0x18] sm:$0xff] %v4271_v0   ;;  %v4266_v10 = vpack.c.bf16 %v5019_v18, %v5017_v2  ;;  %v3497_v19 = vmul.f32 %v5018_v26, %v3433_v40 }
 0x253   : > { %v3525_v35 = vadd.f32 %v3524_v24, %v3494_v20  ;;  %v3462_v1 = vadd.f32 %v3461_v51, %v3431_v25  ;;  %v3495_v52 = vmul.f32 %v5019_v18, %v3431_v25  ;;  %v4974_v42 = vpop.f32.mrb[8].mxu0  ;;  %v6938_v20 = vpop.permute.xlu0 %3378 }
 0x254   : > { %4334 = vst [vmem:[%s6903_s10 + $0x10] sm:$0xff] %v4266_v10   ;;  %v5020_v13 = vadd.f32 %v4974_v42, %v6869_v29  ;;  %v3107_v9 = vpop.f32.mrb[9].mxu0 }
 0x255   : > { %v3463_v12 = vadd.f32 %v3462_v1, %v3432_v63  ;;  %v3526_v4 = vadd.f32 %v3525_v35, %v3495_v52  ;;  %v5021_v32 = vadd.f32 %v3107_v9, %v6871_v28  ;;  %v4975_v50 = vpop.f32.mrb[10].mxu0 }
 0x256   : > { %v5022_v17 = vadd.f32 %v4975_v50, %v6873_v45  ;;  %v3110_v11 = vpop.f32.mrb[11].mxu0  ;;  %v3436_v7 = vmul.f32 %v5020_v13, %v6887_v58 }
 0x257   : > { %v3527_v59 = vadd.f32 %v3526_v4, %v3496_v14  ;;  %v3434_v44 = vmul.f32 %v5021_v32, %v6877_v60  ;;  %v3464_v29 = vadd.f32 %v3463_v12, %v3433_v40  ;;  %v5023_v57 = vadd.f32 %v3110_v11, %v6875_v22  ;;  %v6929_v22 = vpop.permute.xlu1 %3373 }
 0x258   : > { %v4281_v34 = vpack.c.bf16 %v5022_v17, %v5020_v13  ;;  %v3437_v6 = vmul.f32 %v5022_v17, %v6891_v31  ;;  %v3500_v30 = vmul.f32 %v5020_v13, %v3436_v7 }
 0x259   : > { %v3465_v37 = vadd.f32 %v3464_v29, %v3434_v44  ;;  %v3498_v28 = vmul.f32 %v5021_v32, %v3434_v44  ;;  %v3528_v5 = vadd.f32 %v3527_v59, %v3497_v19  ;;  %v3435_v8 = vmul.f32 %v5023_v57, %v6879_v46 }
 0x25a   : > { %4337 = vst [vmem:[%s6903_s10 + $0x28] sm:$0xff] %v4281_v34   ;;  %v4276_v45 = vpack.c.bf16 %v5023_v57, %v5021_v32  ;;  %v3501_v21 = vmul.f32 %v5022_v17, %v3437_v6 }
 0x25b   : > { %v3529_v16 = vadd.f32 %v3528_v5, %v3498_v28  ;;  %v3466_v60 = vadd.f32 %v3465_v37, %v3435_v8  ;;  %v3499_v3 = vmul.f32 %v5023_v57, %v3435_v8  ;;  %v4978_v43 = vpop.f32.mrb[12].mxu0  ;;  %v6941_v10 = vpop.permute.xlu1 %3383 }
 0x25c   : > { %4336 = vst [vmem:[%s6903_s10 + $0x20] sm:$0xff] %v4276_v45   ;;  %v5024_v58 = vadd.f32 %v4978_v43, %v6881_v15  ;;  %v3123_v2 = vpop.f32.mrb[13].mxu0  ;;  %v6948_v37 = vpop.permute.xlu0 %3388 }
 0x25d   : > { %v3467_v53 = vadd.f32 %v3466_v60, %v3436_v7  ;;  %v3530_v26 = vadd.f32 %v3529_v16, %v3499_v3  ;;  %v5025_v46 = vadd.f32 %v3123_v2, %v6883_v56  ;;  %v4979_v31 = vpop.f32.mrb[14].mxu0 }
 0x25e   : > { %v5026_v27 = vadd.f32 %v4979_v31, %v6885_v36  ;;  %v3126_v41 = vpop.f32.mrb[15].mxu0  ;;  %v3440_v15 = vmul.f32 %v5024_v58, %v6897_v54 }
 0x25f   : > { %v3531_v49 = vadd.f32 %v3530_v26, %v3500_v30  ;;  %v3438_v18 = vmul.f32 %v5025_v46, %v6893_v47  ;;  %v3468_v63 = vadd.f32 %v3467_v53, %v3437_v6  ;;  %v5027_v0 = vadd.f32 %v3126_v41, %v6889_v33  ;;  %v6951_v45 = vpop.permute.xlu1 %3393 }
 0x260   : > { %v4291_v51 = vpack.c.bf16 %v5026_v27, %v5024_v58  ;;  %v3441_v36 = vmul.f32 %v5026_v27, %v6899_v48  ;;  %v3504_v12 = vmul.f32 %v5024_v58, %v3440_v15 }
 0x261   : > { %v3469_v24 = vadd.f32 %v3468_v63, %v3438_v18  ;;  %v3502_v56 = vmul.f32 %v5025_v46, %v3438_v18  ;;  %v3532_v25 = vadd.f32 %v3531_v49, %v3501_v21  ;;  %v3439_v40 = vmul.f32 %v5027_v0, %v6895_v62 }
 0x262   : > { %4339 = vst [vmem:[%s6903_s10 + $0x38] sm:$0xff] %v4291_v51   ;;  %v4286_v47 = vpack.c.bf16 %v5027_v0, %v5025_v46  ;;  %v4790_v35 = vpop.f32.mrb[16].mxu1  ;;  %v3505_v17 = vmul.f32 %v5026_v27, %v3441_v36 }
 0x263   : > { %v3533_v1 = vadd.f32 %v3532_v25, %v3502_v56  ;;  %v3470_v33 = vadd.f32 %v3469_v24, %v3439_v40  ;;  %v3503_v52 = vmul.f32 %v5027_v0, %v3439_v40  ;;  %v4982_v54 = vpop.f32.mrb[16].mxu0  ;;  %v1903_v42 = vpop.f32.mrb[17].mxu1 }
 0x264   : > { %4338 = vst [vmem:[%s6903_s10 + $0x30] sm:$0xff] %v4286_v47   ;;  %v5028_v13 = vadd.f32 %v4982_v54, %v4790_v35  ;;  %v3139_v9 = vpop.f32.mrb[17].mxu0  ;;  %v4791_v14 = vpop.f32.mrb[18].mxu1 }
 0x265   : > { %v3471_v4 = vadd.f32 %v3470_v33, %v3440_v15  ;;  %v3534_v32 = vadd.f32 %v3533_v1, %v3503_v52  ;;  %v5029_v62 = vadd.f32 %v3139_v9, %v1903_v42  ;;  %v4983_v50 = vpop.f32.mrb[18].mxu0  ;;  %v1906_v19 = vpop.f32.mrb[19].mxu1 }
 0x266   : > { %v5030_v48 = vadd.f32 %v4983_v50, %v4791_v14  ;;  %v3142_v11 = vpop.f32.mrb[19].mxu0  ;;  %v3444_v7 = vmul.f32 %v5028_v13, %v6915_v38  ;;  %v3399_v25 = vpop.permute.xlu0 %3398 }
 0x267   : > { %v3535_v59 = vadd.f32 %v3534_v32, %v3504_v12  ;;  %v3442_v44 = vmul.f32 %v5029_v62, %v6907_v23  ;;  %v3472_v29 = vadd.f32 %v3471_v4, %v3441_v36  ;;  %v5031_v57 = vadd.f32 %v3142_v11, %v1906_v19  ;;  %v3404_v1 = vpop.permute.xlu1 %3403 }
 0x268   : > { %v4301_v34 = vpack.c.bf16 %v5030_v48, %v5028_v13  ;;  %v3445_v16 = vmul.f32 %v5030_v48, %v6918_v55  ;;  %v3508_v46 = vmul.f32 %v5028_v13, %v3444_v7 }
 0x269   : > { %v3473_v28 = vadd.f32 %v3472_v29, %v3442_v44  ;;  %v3506_v5 = vmul.f32 %v5029_v62, %v3442_v44  ;;  %v3536_v8 = vadd.f32 %v3535_v59, %v3505_v17  ;;  %v3443_v6 = vmul.f32 %v5031_v57, %v6909_v39 }
 0x26a   : > { %4341 = vst [vmem:[%s6903_s10 + $0x48] sm:$0xff] %v4301_v34   ;;  %v4296_v60 = vpack.c.bf16 %v5031_v57, %v5029_v62  ;;  %v4794_v23 = vpop.f32.mrb[20].mxu1  ;;  %v3509_v49 = vmul.f32 %v5030_v48, %v3445_v16 }
 0x26b   : > { %v3537_v3 = vadd.f32 %v3536_v8, %v3506_v5  ;;  %v3474_v43 = vadd.f32 %v3473_v28, %v3443_v6  ;;  %v3507_v58 = vmul.f32 %v5031_v57, %v3443_v6  ;;  %v4986_v38 = vpop.f32.mrb[20].mxu0  ;;  %v1919_v2 = vpop.f32.mrb[21].mxu1 }
 0x26c   : > { %4340 = vst [vmem:[%s6903_s10 + $0x40] sm:$0xff] %v4296_v60   ;;  %v5032_v30 = vadd.f32 %v4986_v38, %v4794_v23  ;;  %v3155_v53 = vpop.f32.mrb[21].mxu0  ;;  %v4795_v26 = vpop.f32.mrb[22].mxu1 }
 0x26d   : > { %v3475_v31 = vadd.f32 %v3474_v43, %v3444_v7  ;;  %v3538_v21 = vadd.f32 %v3537_v3, %v3507_v58  ;;  %v5033_v39 = vadd.f32 %v3155_v53, %v1919_v2  ;;  %v4987_v27 = vpop.f32.mrb[22].mxu0  ;;  %v1922_v41 = vpop.f32.mrb[23].mxu1 }
 0x26e   : > { %v5034_v55 = vadd.f32 %v4987_v27, %v4795_v26  ;;  %v3158_v18 = vpop.f32.mrb[23].mxu0  ;;  %v3448_v24 = vmul.f32 %v5032_v30, %v6938_v20  ;;  %v3409_v28 = vpop.permute.xlu0 %3408 }
 0x26f   : > { %v3539_v63 = vadd.f32 %v3538_v21, %v3508_v46  ;;  %v3446_v0 = vmul.f32 %v5033_v39, %v6927_v61  ;;  %v3476_v15 = vadd.f32 %v3475_v31, %v3445_v16  ;;  %v5035_v51 = vadd.f32 %v3158_v18, %v1922_v41  ;;  %v3414_v60 = vpop.permute.xlu1 %3413 }
 0x270   : > { %v4311_v56 = vpack.c.bf16 %v5034_v55, %v5032_v30  ;;  %v3449_v33 = vmul.f32 %v5034_v55, %v6941_v10  ;;  %v3512_v32 = vmul.f32 %v5032_v30, %v3448_v24 }
 0x271   : > { %v3477_v40 = vadd.f32 %v3476_v15, %v3446_v0  ;;  %v3510_v36 = vmul.f32 %v5033_v39, %v3446_v0  ;;  %v3540_v47 = vadd.f32 %v3539_v63, %v3509_v49  ;;  %v3447_v35 = vmul.f32 %v5035_v51, %v6929_v22 }
 0x272   : > { %4343 = vst [vmem:[%s6903_s10 + $0x58] sm:$0xff] %v4311_v56   ;;  %v4306_v52 = vpack.c.bf16 %v5035_v51, %v5033_v39  ;;  %v4798_v54 = vpop.f32.mrb[24].mxu1  ;;  %v3513_v48 = vmul.f32 %v5034_v55, %v3449_v33  ;;  %v3419_v63 = vpop.permute.xlu0 %3418 }
 0x273   : > { %v3541_v42 = vadd.f32 %v3540_v47, %v3510_v36  ;;  %v3478_v61 = vadd.f32 %v3477_v40, %v3447_v35  ;;  %v3511_v13 = vmul.f32 %v5035_v51, %v3447_v35  ;;  %v4990_v9 = vpop.f32.mrb[24].mxu0  ;;  %v1935_v14 = vpop.f32.mrb[25].mxu1 }
 0x274   : > { %4342 = vst [vmem:[%s6903_s10 + $0x50] sm:$0xff] %v4306_v52   ;;  %v5036_v20 = vadd.f32 %v4990_v9, %v4798_v54  ;;  %v3171_v12 = vpop.f32.mrb[25].mxu0  ;;  %v4799_v4 = vpop.f32.mrb[26].mxu1 }
 0x275   : > { %v3479_v62 = vadd.f32 %v3478_v61, %v3448_v24  ;;  %v3542_v50 = vadd.f32 %v3541_v42, %v3511_v13  ;;  %v5037_v19 = vadd.f32 %v3171_v12, %v1935_v14  ;;  %v4991_v22 = vpop.f32.mrb[26].mxu0  ;;  %v1938_v17 = vpop.f32.mrb[27].mxu1 }
 0x276   : > { %v5038_v10 = vadd.f32 %v4991_v22, %v4799_v4  ;;  %v3174_v11 = vpop.f32.mrb[27].mxu0  ;;  %v3452_v7 = vmul.f32 %v5036_v20, %v3399_v25 }
 0x277   : > { %v3543_v59 = vadd.f32 %v3542_v50, %v3512_v32  ;;  %v3450_v44 = vmul.f32 %v5037_v19, %v6948_v37  ;;  %v3480_v29 = vadd.f32 %v3479_v62, %v3449_v33  ;;  %v5039_v57 = vadd.f32 %v3174_v11, %v1938_v17 }
 0x278   : > { %v4321_v34 = vpack.c.bf16 %v5038_v10, %v5036_v20  ;;  %v3453_v23 = vmul.f32 %v5038_v10, %v3404_v1  ;;  %v3516_v31 = vmul.f32 %v5036_v20, %v3452_v7  ;;  %v3424_v1 = vpop.permute.xlu1 %3423 }
 0x279   : > { %v3481_v5 = vadd.f32 %v3480_v29, %v3450_v44  ;;  %v3514_v8 = vmul.f32 %v5037_v19, %v3450_v44  ;;  %v3544_v6 = vadd.f32 %v3543_v59, %v3513_v48  ;;  %v3451_v16 = vmul.f32 %v5039_v57, %v6951_v45 }
 0x27a   : > { %4345 = vst [vmem:[%s6903_s10 + $0x68] sm:$0xff] %v4321_v34   ;;  %v4316_v3 = vpack.c.bf16 %v5039_v57, %v5037_v19  ;;  %v4802_v43 = vpop.f32.mrb[28].mxu1  ;;  %v3517_v49 = vmul.f32 %v5038_v10, %v3453_v23 }
 0x27b   : > { %v3545_v58 = vadd.f32 %v3544_v6, %v3514_v8  ;;  %v3482_v38 = vadd.f32 %v3481_v5, %v3451_v16  ;;  %v3515_v37 = vmul.f32 %v5039_v57, %v3451_v16  ;;  %v4994_v2 = vpop.f32.mrb[28].mxu0  ;;  %v1951_v30 = vpop.f32.mrb[29].mxu1 }
 0x27c   : > { %4344 = vst [vmem:[%s6903_s10 + $0x60] sm:$0xff] %v4316_v3   ;;  %v5040_v53 = vadd.f32 %v4994_v2, %v4802_v43  ;;  %v3187_v26 = vpop.f32.mrb[29].mxu0  ;;  %v4803_v46 = vpop.f32.mrb[30].mxu1 }
 0x27d   : > { %v3483_v21 = vadd.f32 %v3482_v38, %v3452_v7  ;;  %v3546_v45 = vadd.f32 %v3545_v58, %v3515_v37  ;;  %v5041_v39 = vadd.f32 %v3187_v26, %v1951_v30  ;;  %v4995_v27 = vpop.f32.mrb[30].mxu0  ;;  %v1954_v41 = vpop.f32.mrb[31].mxu1 }
 0x27e   : > { %v6967_v55 = vadd.f32 %v4995_v27, %v4803_v46  ;;  %v3190_v18 = vpop.f32.mrb[31].mxu0  ;;  %v3456_v56 = vmul.f32 %v5040_v53, %v3419_v63 }
 0x27f   : > { %v3547_v0 = vadd.f32 %v3546_v45, %v3516_v31  ;;  %v3454_v15 = vmul.f32 %v5041_v39, %v3409_v28  ;;  %v3484_v51 = vadd.f32 %v3483_v21, %v3453_v23  ;;  %v5043_v24 = vadd.f32 %v3190_v18, %v1954_v41 }
 0x280   : > { %v4331_v25 = vpack.c.bf16 %v6967_v55, %v5040_v53  ;;  %v3457_v54 = vmul.f32 %v6967_v55, %v3424_v1  ;;  %v3520_v13 = vmul.f32 %v5040_v53, %v3456_v56 }
 0x281   : > { %v3485_v40 = vadd.f32 %v3484_v51, %v3454_v15  ;;  %v3518_v36 = vmul.f32 %v5041_v39, %v3454_v15  ;;  %v3548_v47 = vadd.f32 %v3547_v0, %v3517_v49  ;;  %v3455_v35 = vmul.f32 %v5043_v24, %v3414_v60 }
 0x282   : > { %4347 = vst [vmem:[%s6903_s10 + $0x78] sm:$0xff] %v4331_v25   ;;  %v4326_v33 = vpack.c.bf16 %v5043_v24, %v5041_v39 }
 0x283   : > { %v3549_v52 = vadd.f32 %v3548_v47, %v3518_v36  ;;  %v3486_v42 = vadd.f32 %v3485_v40, %v3455_v35  ;;  %v3519_v61 = vmul.f32 %v5043_v24, %v3455_v35 }
 0x284   : > { %4346 = vst [vmem:[%s6903_s10 + $0x70] sm:$0xff] %v4326_v33   ;;  %s5544_s10 = scalar_lea.vmem %s5543_s21, 4096 }
 0x285   : > { %v3487_v9 = vadd.f32 %v3486_v42, %v3456_v56  ;;  %v3550_v14 = vadd.f32 %v3549_v52, %v3519_v61  ;;  %p5546_p5 = scmp.lt.s32.totalorder %s5544_s10, %s5538_s29 }
 0x287   : > { %p5547_p9 = por %p5546_p5, %p5545_p1 }
 0x289   : > { %p5548_p4 = pnand %p5547_p9, %p5541_p13 }
 0x28b   : > { %5551 = shalt.err (!%p5548_p4)
}
 0x28c   : > { %s5552_s19 = scalar_lea.hbm %s6975_s15, 2048  ;;  %s5556_s20 = scalar_lea.hbm %s7121_s4, 6144 }
 0x28d   : > { %p5553_p0 = scmp.ne.s32.totalorder %s6975_s15, %s5552_s19  ;;  %p5557_p6 = scmp.lt.u32.totalorder %s6975_s15, %s7121_s4 }
 0x28e   : > { %p5558_p10 = scmp.lt.u32.totalorder %s5556_s20, %s5552_s19  ;;  %p5560_p7 = scmp.lt.u32.totalorder %s5552_s19, %s6975_s15 }
 0x28f   : > { %p5554_p3 = pnand %p5553_p0, %p7182_p2 }
 0x290   : > { %p5559_p12 = por %p5558_p10, %p5557_p6 }
 0x291   : > { %p5555_p8 = pneg %p5554_p3 }
 0x292   : > { %p5561_p11 = por %p5560_p7, %p5559_p12 }
 0x294   : > { %p5562_p13 = pnand %p5561_p11, %p5555_p8 }
 0x296   : > { %5565 = shalt.err (!%p5562_p13)
}
 0x297   : > { %s5700_s29 = smov 64   ;;  %s5701_s18 = smov 4   ;;  %v3521_v20 = vmul.f32 %v6967_v55, %v3457_v54  ;;  %v3551_v12 = vadd.f32 %v3550_v14, %v3520_v13  ;;  %v3488_v4 = vadd.f32 %v3487_v9, %v3457_v54 }
 0x298   : > { %5272 = dma.vmem_to_hbm [thread:$0]  (%p7182_p2), %s6977_s16, 2048, %s6975_s15, %s3715_s26, %s5700_s29, %s5700_s29, %s5701_s18  }
 0x299   : > { %s7015_s9 = scalar_lea.vmem [#allocation10], %s3950_s0  ;;  %s7024_s20 = scalar_lea.hbm %s7122_s5, %s4212_s11  ;;  %v3552_v32 = vadd.f32 %v3551_v12, %v3521_v20  ;;  %3489 = vst [vmem:[%s6986_s8] sm:$0xff] %v3488_v4 }
 0x29a   : > { %s3767_s10 = sshll.u32 %s7015_s9, 4  ;;  %s7183_s21 = sshll.u32 %s6986_s8, 4  ;;  %s7028_s21 = int_to_ptr.vmem [resolvable:$true] %s7183_s21  ;;  %s7038_s10 = int_to_ptr.vmem [resolvable:$true] %s3767_s10 }
 0x29b   : > { %s7036_s16 = scalar_lea.hbm %s7123_s6, %s4212_s11  ;;  %s7184_s15 = sand.u32 1, %s5775_s28  }
 0x29c   : > { %s7042_s26 = scalar_lea.sflag [#allocation9], %s7184_s15  ;;  %s5566_s29 = scalar_lea.vmem %s7028_s21, 128 }
 0x29d   : > { %p5567_p1 = scmp.ne.s32.totalorder %s7028_s21, %s5566_s29  ;;  %s5702_s18 = smov [#allocation8]  }
 0x29e   : > { %s5570_s19 = sshll.u32 %s5702_s18, 4  ;;  %s5571_s19 = int_to_ptr.vmem [resolvable:$false] %s5570_s19 }
 0x29f   : > { %p5568_p5 = pnand %p5567_p1, %p7182_p2  ;;  %s5572_s8 = scalar_lea.vmem %s5571_s19, 256 }
 0x2a0   : > { %p5573_p4 = scmp.lt.s32.totalorder %s7028_s21, %s5571_s19  ;;  %p5574_p0 = scmp.lt.s32.totalorder %s5572_s8, %s5566_s29 }
 0x2a1   : > { %p5569_p9 = pneg %p5568_p5 }
 0x2a2   : > { %p5575_p3 = por %p5574_p0, %p5573_p4 }
 0x2a4   : > { %p5576_p8 = pnand %p5575_p3, %p5569_p9 }
 0x2a6   : > { %5579 = shalt.err (!%p5576_p8)
}
 0x2a7   : > { %s5580_s28 = scalar_lea.hbm %s7024_s20, 128  ;;  %s5584_s14 = scalar_lea.hbm %s7122_s5, 384 }
 0x2a8   : > { %p5581_p6 = scmp.ne.s32.totalorder %s7024_s20, %s5580_s28  ;;  %p5585_p7 = scmp.lt.u32.totalorder %s7024_s20, %s7122_s5 }
 0x2a9   : > { %p5586_p11 = scmp.lt.u32.totalorder %s5584_s14, %s5580_s28  ;;  %p5588_p1 = scmp.lt.u32.totalorder %s5580_s28, %s7024_s20 }
 0x2aa   : > { %p5582_p10 = pnand %p5581_p6, %p7182_p2 }
 0x2ab   : > { %p5587_p13 = por %p5586_p11, %p5585_p7 }
 0x2ac   : > { %p5583_p12 = pneg %p5582_p10 }
 0x2ad   : > { %p5589_p5 = por %p5588_p1, %p5587_p13 }
 0x2af   : > { %p5590_p9 = pnand %p5589_p5, %p5583_p12 }
 0x2b1   : > { %5593 = shalt.err (!%p5590_p9)
}
 0x2b2   : > { %5273 = dma.vmem_to_hbm [thread:$0]  (%p7182_p2), %s7028_s21, 128, %s7024_s20, %s7042_s26   ;;  %3553 = vst [vmem:[%s7015_s9] sm:$0xff] %v3552_v32 }
 0x2b3   : > { %s5594_s29 = scalar_lea.vmem %s7038_s10, 128  ;;  %s5703_s18 = smov [#allocation10]  }
 0x2b4   : > { %p5595_p4 = scmp.ne.s32.totalorder %s7038_s10, %s5594_s29  ;;  %s5598_s19 = sshll.u32 %s5703_s18, 4  ;;  %s5599_s19 = int_to_ptr.vmem [resolvable:$false] %s5598_s19 }
 0x2b5   : > { %s5600_s8 = scalar_lea.vmem %s5599_s19, 256  ;;  %p5601_p8 = scmp.lt.s32.totalorder %s7038_s10, %s5599_s19 }
 0x2b6   : > { %p5596_p0 = pnand %p5595_p4, %p7182_p2  ;;  %p5602_p6 = scmp.lt.s32.totalorder %s5600_s8, %s5594_s29 }
 0x2b8   : > { %p5597_p3 = pneg %p5596_p0  ;;  %p5603_p10 = por %p5602_p6, %p5601_p8 }
 0x2ba   : > { %p5604_p12 = pnand %p5603_p10, %p5597_p3 }
 0x2bc   : > { %5607 = shalt.err (!%p5604_p12)
}
 0x2bd   : > { %s5608_s9 = scalar_lea.hbm %s7036_s16, 128  ;;  %s5612_s28 = scalar_lea.hbm %s7123_s6, 384 }
 0x2be   : > { %p5609_p7 = scmp.ne.s32.totalorder %s7036_s16, %s5608_s9  ;;  %p5613_p1 = scmp.lt.u32.totalorder %s7036_s16, %s7123_s6 }
 0x2bf   : > { %p5614_p5 = scmp.lt.u32.totalorder %s5612_s28, %s5608_s9  ;;  %p5616_p4 = scmp.lt.u32.totalorder %s5608_s9, %s7036_s16 }
 0x2c0   : > { %p5610_p11 = pnand %p5609_p7, %p7182_p2 }
 0x2c1   : > { %p5615_p9 = por %p5614_p5, %p5613_p1 }
 0x2c2   : > { %p5611_p13 = pneg %p5610_p11 }
 0x2c3   : > { %p5617_p0 = por %p5616_p4, %p5615_p9 }
 0x2c5   : > { %p5618_p3 = pnand %p5617_p0, %p5611_p13 }
 0x2c7   : > { %5621 = shalt.err (!%p5618_p3)
}
 0x2c8   : > { %5274 = dma.vmem_to_hbm [thread:$0]  (%p7182_p2), %s7038_s10, 128, %s7036_s16, %s7042_s26  }
 0x2c9 PF: > { %p5296_p8 = scmp.ge.s32.totalorder %s5692_s27, 2  ;;  %s3779_s14 = sand.u32 1, %s5680_s24  }
 0x2ca   : > { %p7185_p6 = scmp.ne.s32.totalorder %s7154_s13, 0  ;;  %s3780_s0 = scalar_lea.sflag [#allocation4], %s3779_s14 }
 0x2cc   : > { %p5286_p10 = pnand %p5296_p8, %p7185_p6 }
 0x2ce   : > { %5659 = dma.done.wait (!%p5286_p10), %s3780_s0, 2048  }
 0x2cf   : > { %5661 = vsyncadd (!%p5286_p10), %s3780_s0, 4294965248  ;;  %s7186_s15 = sadd.s32 4294967294, %s5692_s27  }
 0x2d0   : > { %s3788_s29 = sand.u32 1, %s7186_s15  }
 0x2d1   : > { %s3789_s18 = scalar_lea.sflag [#allocation9], %s3788_s29 }
 0x2d2   : > { %5663 = dma.done.wait (!%p5286_p10), %s3789_s18, 256  }
 0x2d3   : > { %5665 = vsyncadd (!%p5286_p10), %s3789_s18, 4294967040  ;;  %s7187_s12 = sld [smem:[#allocation15_spill]]  ;;  %s7188_s26 = sld [smem:[#allocation16_spill]] }
 0x2d4   : > { %p26_p2 = scmp.ge.s32.totalorder %s5779_s30, 5   ;;  %s7189_s21 = smov %s5672_s22 }
 0x2d5   : > { %s7190_s22 = smov %s5676_s23  ;;  %s7191_s23 = smov %s5889_s7 }
 0x2d6   : > { %s7192_s24 = smov %s5684_s25  ;;  %s7194_s27 = smov %s5779_s30 }
 0x2d7   :  { %28 = sbr.rel (!%p26_p2) target bundleno = 13 (0xd), region = 137 }
 0x2d9   : > { %s7193_s25 = smov %s7187_s12 }
 0x2de   :  { %3803 = vsyncpa [#allocation3], 1 }
 0x2df   :  { %3805 = vsyncpa [#allocation3 + $0x1], 1 }
 0x2e0   :  { %3806 = vsyncpa [#allocation6], 1 }
 0x2e1   :  { %3808 = vsyncpa [#allocation6 + $0x1], 1 }
 0x2e2   :  { %3809 = vsyncpa [#allocation4], 1 }
 0x2e3   :  { %3811 = vsyncpa [#allocation4 + $0x1], 1 }
 0x2e4   :  { %3812 = vsyncpa [#allocation9], 1 }
 0x2e5   :  { %3814 = vsyncpa [#allocation9 + $0x1], 1 }

</bundles_post_ra>
